<compile_context>
chip_gen: v6e
topology: v6e:2x2x1
jax: 0.10.0
libtpu: 0.0.40
codegen_flags: <defaults>
</compile_context>

<pallas_src>
import math
from functools import partial

import jax
import jax.numpy as jnp
from jax.experimental import pallas as pl
from jax.experimental.pallas import tpu as pltpu

# Module hyper-params (256 / 512 fixed by the PyTorch module).
STATE_SPACE = 16
Z_SIZE = 8
ACTION_SPACE = 4
H1 = 256            # fc_s / fc_z output width
H2 = 512            # hidden width (= 2 * H1 after concat)
SZ = STATE_SPACE + Z_SIZE

_HALF_LOG_2PI = 0.5 * math.log(2.0 * math.pi)

# Fixed per-grid-step pipeline overhead (~0.35 us) expressed in batch rows of
# hidden-layer matmul work (~0.29 us per 512 rows on v6e/v7x).
_STEP_OVERHEAD_ROWS = 512


def _cdiv(a, b):
    return -(-a // b)


def _round_up(x, m):
    return ((x + m - 1) // m) * m


def _softplus(x):
    # Numerically stable softplus, matches F.softplus default (beta=1).
    return jnp.maximum(x, 0.0) + jnp.log1p(jnp.exp(-jnp.abs(x)))


def _choose_tile(B, tb_max):
    """Pick (tile_rows, padded_batch).

    Batch sits on the lane axis of the transposed output, so when the grid has
    more than one step the tile must be a multiple of 128.  A small cost model
    (padded compute rows + fixed per-step overhead) trades padding waste
    against grid-step overhead, and the grid is forced to >=2 steps for larger
    batches so v7x's two TensorCores both get work ("parallel" axis).
    """
    if B < 256:
        # Single grid step: block covers the whole (16-row padded) batch, so
        # the (8,128) rule is satisfied via "block == full array dims".
        tb = _round_up(B, 16)
        return tb, tb
    tb_max = max(128, (tb_max // 128) * 128)
    min_steps = max(2, _cdiv(B, tb_max))      # >=2 keeps both v7x TCs busy
    best = None
    for n_steps in range(min_steps, min_steps + 32):
        tb = 128 * _cdiv(_cdiv(B, n_steps), 128)
        b_pad = _round_up(B, tb)
        cost = (b_pad // tb) * (tb + _STEP_OVERHEAD_ROWS)
        if best is None or cost < best[0]:
            best = (cost, tb, b_pad)
        if tb == 128:
            break
    return best[1], best[2]


def policy_kernel(xz_ref, eps_ref, w_sz_ref, w_h_ref, w_head_ref,
                  b_h12_ref, b_head_ref, out_ref):
    f32 = jnp.float32
    bf16 = jnp.bfloat16
    A = ACTION_SPACE

    # Everything is feature-major: (features, batch) with batch on the lanes.
    # Fused fc_s / fc_z: block_diag(W_s, W_z)^T @ [obs|z]^T, f32 acc.
    sz = jnp.dot(w_sz_ref[...], xz_ref[...], preferred_element_type=f32)
    # Bias-add in f32 (accuracy), ReLU + bf16 cast fused into one expression.
    sz = jnp.maximum(sz + b_h12_ref[:, 0:1], 0.0).astype(bf16)

    # hidden layer on the (implicitly concatenated) 512-wide features.
    h = jnp.dot(w_h_ref[...], sz, preferred_element_type=f32)
    h = jnp.maximum(h + b_h12_ref[:, 1:2], 0.0).astype(bf16)

    # Fused mu / sigma heads: one (2A, H2) @ (H2, tb) matmul -> (2A, tb).
    head = (jnp.dot(w_head_ref[...], h, preferred_element_type=f32)
            + b_head_ref[...])
    mu = head[0:A, :]
    # Note: softplus can underflow to 0 for very negative pre-activations and
    # log(sigma) then gives -inf; this matches the f32 / PyTorch behavior.
    sigma = _softplus(head[A:2 * A, :])

    # rsample: a = mu + sigma*eps.  log_prob per element; since
    # actions - mu == sigma*eps exactly, the quadratic term is -0.5*eps^2.
    eps = eps_ref[...]                              # (A, tb)
    actions = mu + sigma * eps
    logp = -0.5 * eps * eps - jnp.log(sigma) - _HALF_LOG_2PI

    # Lane-dense stores: full 128-lane rows, batch on the lane axis.
    out_ref[0:A, :] = actions
    out_ref[A:2 * A, :] = logp


def init_params(key):
    """Linear-style U(-1/sqrt(fan_in), 1/sqrt(fan_in)) init, f32 master copy."""
    def linear(k, fan_in, fan_out):
        kw, kb = jax.random.split(k)
        bound = 1.0 / math.sqrt(fan_in)
        w = jax.random.uniform(kw, (fan_in, fan_out), jnp.float32, -bound, bound)
        b = jax.random.uniform(kb, (1, fan_out), jnp.float32, -bound, bound)
        return w, b

    ks = jax.random.split(key, 5)
    w_s, b_s = linear(ks[0], STATE_SPACE, H1)
    w_z, b_z = linear(ks[1], Z_SIZE, H1)
    w_h, b_h = linear(ks[2], H2, H2)
    w_mu, b_mu = linear(ks[3], H2, ACTION_SPACE)
    w_sig, b_sig = linear(ks[4], H2, ACTION_SPACE)
    return dict(w_s=w_s, b_s=b_s, w_z=w_z, b_z=b_z, w_h=w_h, b_h=b_h,
                w_mu=w_mu, b_mu=b_mu, w_sig=w_sig, b_sig=b_sig)


def pack_params(params):
    """Fuse / transpose the PyTorch-layout params into the kernel layout."""
    bf16 = jnp.bfloat16
    # Block-diagonal [S+Z, 2*H1] so a single matmul does both projections.
    w_sz = jnp.zeros((SZ, H2), jnp.float32)
    w_sz = w_sz.at[:STATE_SPACE, :H1].set(params["w_s"])
    w_sz = w_sz.at[STATE_SPACE:, H1:].set(params["w_z"])
    w_head = jnp.concatenate([params["w_mu"], params["w_sig"]], axis=1)  # (H2,2A)
    b_1 = jnp.concatenate([params["b_s"], params["b_z"]], axis=1)        # (1, H2)
    b_h12 = jnp.concatenate([b_1, params["b_h"]], axis=0).T              # (H2, 2)
    b_head_t = jnp.concatenate([params["b_mu"], params["b_sig"]], axis=1).T
    return dict(
        w_sz_t=w_sz.T.astype(bf16),            # (H2, SZ)
        w_h_t=params["w_h"].T.astype(bf16),    # (H2, H2)
        w_head_t=w_head.T.astype(bf16),        # (2A, H2)
        b_h12=b_h12.astype(jnp.float32),       # (H2, 2): cols [b_s|b_z], b_h
        b_head_t=b_head_t.astype(jnp.float32), # (2A, 1): [b_mu; b_sig]
    )


@partial(jax.jit, static_argnames=("tb_max",))
def policy_forward(obs, z, packed, eps, *, tb_max=2048):
    """PolicyNet forward as one batch-tiled (batch-on-lanes) Pallas kernel."""
    B = obs.shape[0]
    A = ACTION_SPACE
    tb, B_pad = _choose_tile(B, tb_max)

    # Feature-major inputs: (features, batch).
    xz_t = jnp.concatenate([obs, z], axis=1).astype(jnp.bfloat16).T   # (SZ, B)
    eps_t = eps.astype(jnp.float32).T                                 # (A, B)
    if B_pad != B:
        pad = ((0, 0), (0, B_pad - B))
        xz_t = jnp.pad(xz_t, pad)
        eps_t = jnp.pad(eps_t, pad)

    def batched(rows):
        return pl.BlockSpec((rows, tb), lambda i: (0, i))

    def resident(shape):
        return pl.BlockSpec(shape, lambda i: (0, 0))

    out = pl.pallas_call(
        policy_kernel,
        out_shape=jax.ShapeDtypeStruct((2 * A, B_pad), jnp.float32),
        grid=(B_pad // tb,),
        in_specs=[
            batched(SZ),               # xz^T   (batch-tiled, batch on lanes)
            batched(A),                # eps^T
            resident((H2, SZ)),        # w_sz^T (resident across grid steps)
            resident((H2, H2)),        # w_h^T
            resident((2 * A, H2)),     # w_head^T ([w_mu | w_sig]^T)
            resident((H2, 2)),         # layer-1/2 bias columns
            resident((2 * A, 1)),      # head bias column
        ],
        out_specs=batched(2 * A),
        compiler_params=pltpu.CompilerParams(
            dimension_semantics=("parallel",),
            vmem_limit_bytes=48 * 1024 * 1024),
    )(xz_t, eps_t, packed["w_sz_t"], packed["w_h_t"], packed["w_head_t"],
      packed["b_h12"], packed["b_head_t"])

    actions = out[:A, :B].T
    log_probs = jnp.sum(out[A:, :B], axis=0, keepdims=True).T
    return actions, log_probs


def reference_forward_f32(obs, z, params, eps):
    """Pure-JAX f32 reference (matches the PyTorch module)."""
    obs_h = jax.nn.relu(obs @ params["w_s"] + params["b_s"])
    z_h = jax.nn.relu(z @ params["w_z"] + params["b_z"])
    x = jnp.concatenate([obs_h, z_h], axis=1)
    h = jax.nn.relu(x @ params["w_h"] + params["b_h"])
    mu = h @ params["w_mu"] + params["b_mu"]
    sigma = jax.nn.softplus(h @ params["w_sig"] + params["b_sig"])
    actions = mu + sigma * eps
    logp = (-((actions - mu) ** 2) / (2.0 * sigma ** 2)
            - jnp.log(sigma) - _HALF_LOG_2PI)
    return actions, jnp.sum(logp, axis=1, keepdims=True)


def reference_forward_bf16(obs, z, packed, eps):
    """Pure-JAX reference with the same layout / bf16 cast points as kernel."""
    bf16, f32 = jnp.bfloat16, jnp.float32
    A = ACTION_SPACE
    xz_t = jnp.concatenate([obs, z], axis=1).astype(bf16).T
    sz = jnp.maximum(
        jnp.dot(packed["w_sz_t"], xz_t, preferred_element_type=f32)
        + packed["b_h12"][:, 0:1], 0.0).astype(bf16)
    h = jnp.maximum(
        jnp.dot(packed["w_h_t"], sz, preferred_element_type=f32)
        + packed["b_h12"][:, 1:2], 0.0).astype(bf16)
    head = (jnp.dot(packed["w_head_t"], h, preferred_element_type=f32)
            + packed["b_head_t"])
    mu = head[:A, :]
    sigma = jax.nn.softplus(head[A:, :])
    eps_t = eps.T
    actions = mu + sigma * eps_t
    logp = -0.5 * eps_t * eps_t - jnp.log(sigma) - _HALF_LOG_2PI
    return actions.T, jnp.sum(logp, axis=0, keepdims=True).T


if __name__ == "__main__":
    key = jax.random.PRNGKey(0)
    k_param, k_obs, k_z, k_eps = jax.random.split(key, 4)

    params = init_params(k_param)
    packed = pack_params(params)

    # Small deterministic example (batch=2): single-step grid.
    B = 2
    obs = jax.random.normal(k_obs, (B, STATE_SPACE), jnp.float32)
    z = jax.random.normal(k_z, (B, Z_SIZE), jnp.float32)
    eps = jax.random.normal(k_eps, (B, ACTION_SPACE), jnp.float32)

    actions, log_probs = policy_forward(obs, z, packed, eps)
    actions = jax.block_until_ready(actions)
    log_probs = jax.block_until_ready(log_probs)

    assert actions.shape == (B, ACTION_SPACE)
    assert log_probs.shape == (B, 1)

    # Tight check vs. a reference with identical bf16 cast points.
    ra_bf, rl_bf = reference_forward_bf16(obs, z, packed, eps)
    assert jnp.allclose(actions, ra_bf, atol=2e-3, rtol=2e-3)
    assert jnp.allclose(log_probs, rl_bf, atol=2e-3, rtol=2e-3)

    # Loose check vs. the full-f32 PyTorch-equivalent reference.
    ra_f, rl_f = reference_forward_f32(obs, z, params, eps)
    assert jnp.allclose(actions, ra_f, atol=1e-1, rtol=1e-1)
    assert jnp.allclose(log_probs, rl_f, atol=1e-1, rtol=1e-1)

    # Second run: multi-step "parallel" batch grid (2 steps of 256) + padding.
    B2 = 300
    obs2 = jax.random.normal(jax.random.PRNGKey(1), (B2, STATE_SPACE), jnp.float32)
    z2 = jax.random.normal(jax.random.PRNGKey(2), (B2, Z_SIZE), jnp.float32)
    eps2 = jax.random.normal(jax.random.PRNGKey(3), (B2, ACTION_SPACE), jnp.float32)
    a2, l2 = policy_forward(obs2, z2, packed, eps2)
    a2 = jax.block_until_ready(a2)
    l2 = jax.block_until_ready(l2)
    ra2, rl2 = reference_forward_bf16(obs2, z2, packed, eps2)
    assert a2.shape == (B2, ACTION_SPACE) and l2.shape == (B2, 1)
    assert jnp.allclose(a2, ra2, atol=2e-3, rtol=2e-3)
    assert jnp.allclose(l2, rl2, atol=2e-3, rtol=2e-3)

    print("KERNEL_OK")
</pallas_src>

<mosaic_0001>
module attributes {stable_mosaic.version = 11 : i64} {
  func.func @policy_kernel(%arg0: i32, %arg1: memref<24x16xbf16, #tpu.memory_space<vmem>>, %arg2: memref<4x16xf32, #tpu.memory_space<vmem>>, %arg3: memref<512x24xbf16, #tpu.memory_space<vmem>>, %arg4: memref<512x512xbf16, #tpu.memory_space<vmem>>, %arg5: memref<8x512xbf16, #tpu.memory_space<vmem>>, %arg6: memref<512x2xf32, #tpu.memory_space<vmem>>, %arg7: memref<8x1xf32, #tpu.memory_space<vmem>>, %arg8: memref<8x16xf32, #tpu.memory_space<vmem>>) attributes {dimension_semantics = [#tpu.dimension_semantics<parallel>], iteration_bounds = array<i64: 1>, scalar_prefetch = 0 : i64, scratch_operands = 0 : i64, tpu.core_type = #tpu.core_type<tc>, window_params = [{transform_indices = @transform_0, window_bounds = array<i64: 24, 16>}, {transform_indices = @transform_1, window_bounds = array<i64: 4, 16>}, {pipeline_mode = #tpu.pipeline_mode<synchronous>, transform_indices = @transform_2, window_bounds = array<i64: 512, 24>}, {pipeline_mode = #tpu.pipeline_mode<synchronous>, transform_indices = @transform_3, window_bounds = array<i64: 512, 512>}, {pipeline_mode = #tpu.pipeline_mode<synchronous>, transform_indices = @transform_4, window_bounds = array<i64: 8, 512>}, {pipeline_mode = #tpu.pipeline_mode<synchronous>, transform_indices = @transform_5, window_bounds = array<i64: 512, 2>}, {pipeline_mode = #tpu.pipeline_mode<synchronous>, transform_indices = @transform_6, window_bounds = array<i64: 8, 1>}, {transform_indices = @transform_7, window_bounds = array<i64: 8, 16>}]} {
    %c0 = arith.constant 0 : index
    %c0_0 = arith.constant 0 : index
    %0 = vector.load %arg3[%c0, %c0_0] : memref<512x24xbf16, #tpu.memory_space<vmem>>, vector<512x24xbf16>
    %c0_1 = arith.constant 0 : index
    %c0_2 = arith.constant 0 : index
    %1 = vector.load %arg1[%c0_1, %c0_2] : memref<24x16xbf16, #tpu.memory_space<vmem>>, vector<24x16xbf16>
    %cst = arith.constant dense<0.000000e+00> : vector<512x16xf32>
    %2 = tpu.matmul %0, %1, %cst {dimension_numbers = #tpu.dot_dimension_numbers<[1], [0], [0], [1], [0, 0, 1, 1], [], []>} : vector<512x24xbf16>, vector<24x16xbf16>, vector<512x16xf32> -> vector<512x16xf32>
    %c0_3 = arith.constant 0 : index
    %c0_4 = arith.constant 0 : index
    %3 = vector.load %arg6[%c0_3, %c0_4] : memref<512x2xf32, #tpu.memory_space<vmem>>, vector<512x1xf32>
    %4 = vector.broadcast %3 : vector<512x1xf32> to vector<512x16xf32>
    %5 = arith.addf %2, %4 : vector<512x16xf32>
    %cst_5 = arith.constant 0.000000e+00 : f32
    %6 = vector.broadcast %cst_5 : f32 to vector<512x16xf32>
    %7 = arith.maximumf %5, %6 : vector<512x16xf32>
    %8 = arith.truncf %7 : vector<512x16xf32> to vector<512x16xbf16>
    %c0_6 = arith.constant 0 : index
    %c0_7 = arith.constant 0 : index
    %9 = vector.load %arg4[%c0_6, %c0_7] : memref<512x512xbf16, #tpu.memory_space<vmem>>, vector<512x512xbf16>
    %cst_8 = arith.constant dense<0.000000e+00> : vector<512x16xf32>
    %10 = tpu.matmul %9, %8, %cst_8 {dimension_numbers = #tpu.dot_dimension_numbers<[1], [0], [0], [1], [0, 0, 1, 1], [], []>} : vector<512x512xbf16>, vector<512x16xbf16>, vector<512x16xf32> -> vector<512x16xf32>
    %c0_9 = arith.constant 0 : index
    %c1 = arith.constant 1 : index
    %11 = vector.load %arg6[%c0_9, %c1] : memref<512x2xf32, #tpu.memory_space<vmem>>, vector<512x1xf32>
    %12 = vector.broadcast %11 : vector<512x1xf32> to vector<512x16xf32>
    %13 = arith.addf %10, %12 : vector<512x16xf32>
    %cst_10 = arith.constant 0.000000e+00 : f32
    %14 = vector.broadcast %cst_10 : f32 to vector<512x16xf32>
    %15 = arith.maximumf %13, %14 : vector<512x16xf32>
    %16 = arith.truncf %15 : vector<512x16xf32> to vector<512x16xbf16>
    %c0_11 = arith.constant 0 : index
    %c0_12 = arith.constant 0 : index
    %17 = vector.load %arg5[%c0_11, %c0_12] : memref<8x512xbf16, #tpu.memory_space<vmem>>, vector<8x512xbf16>
    %cst_13 = arith.constant dense<0.000000e+00> : vector<8x16xf32>
    %18 = tpu.matmul %17, %16, %cst_13 {dimension_numbers = #tpu.dot_dimension_numbers<[1], [0], [0], [1], [0, 0, 1, 1], [], []>} : vector<8x512xbf16>, vector<512x16xbf16>, vector<8x16xf32> -> vector<8x16xf32>
    %c0_14 = arith.constant 0 : index
    %c0_15 = arith.constant 0 : index
    %19 = vector.load %arg7[%c0_14, %c0_15] : memref<8x1xf32, #tpu.memory_space<vmem>>, vector<8x1xf32>
    %20 = vector.broadcast %19 : vector<8x1xf32> to vector<8x16xf32>
    %21 = arith.addf %18, %20 : vector<8x16xf32>
    %22 = vector.extract_strided_slice %21 {offsets = [0, 0], sizes = [4, 16], strides = [1, 1]} : vector<8x16xf32> to vector<4x16xf32>
    %23 = vector.extract_strided_slice %21 {offsets = [4, 0], sizes = [4, 16], strides = [1, 1]} : vector<8x16xf32> to vector<4x16xf32>
    %cst_16 = arith.constant 0.000000e+00 : f32
    %24 = vector.broadcast %cst_16 : f32 to vector<4x16xf32>
    %25 = arith.maximumf %23, %24 : vector<4x16xf32>
    %26 = math.absf %23 : vector<4x16xf32>
    %cst_17 = arith.constant 0.000000e+00 : f32
    %27 = vector.broadcast %cst_17 : f32 to vector<4x16xf32>
    %28 = arith.subf %27, %26 : vector<4x16xf32>
    %29 = math.exp %28 : vector<4x16xf32>
    %30 = math.log1p %29 : vector<4x16xf32>
    %31 = arith.addf %25, %30 : vector<4x16xf32>
    %c0_18 = arith.constant 0 : index
    %c0_19 = arith.constant 0 : index
    %32 = vector.load %arg2[%c0_18, %c0_19] : memref<4x16xf32, #tpu.memory_space<vmem>>, vector<4x16xf32>
    %33 = arith.mulf %31, %32 : vector<4x16xf32>
    %34 = arith.addf %22, %33 : vector<4x16xf32>
    %cst_20 = arith.constant -5.000000e-01 : f32
    %35 = vector.broadcast %cst_20 : f32 to vector<4x16xf32>
    %36 = arith.mulf %35, %32 : vector<4x16xf32>
    %37 = arith.mulf %36, %32 : vector<4x16xf32>
    %38 = math.log %31 : vector<4x16xf32>
    %39 = arith.subf %37, %38 : vector<4x16xf32>
    %cst_21 = arith.constant 0.918938517 : f32
    %40 = vector.broadcast %cst_21 : f32 to vector<4x16xf32>
    %41 = arith.subf %39, %40 : vector<4x16xf32>
    %c0_22 = arith.constant 0 : index
    %c0_23 = arith.constant 0 : index
    %42 = vector.load %arg8[%c0_22, %c0_23] : memref<8x16xf32, #tpu.memory_space<vmem>>, vector<4x16xf32>
    tpu.vector_store %arg8[%c0_22, %c0_23], %34 {strides = array<i32>} : memref<8x16xf32, #tpu.memory_space<vmem>>, vector<4x16xf32>,
    %c4 = arith.constant 4 : index
    %c0_24 = arith.constant 0 : index
    %43 = vector.load %arg8[%c4, %c0_24] : memref<8x16xf32, #tpu.memory_space<vmem>>, vector<4x16xf32>
    tpu.vector_store %arg8[%c4, %c0_24], %41 {strides = array<i32>} : memref<8x16xf32, #tpu.memory_space<vmem>>, vector<4x16xf32>,
    return
  }
  func.func @transform_0(%arg0: i32) -> (i32, i32) {
    %c0_i32 = arith.constant 0 : i32
    %c0_i32_0 = arith.constant 0 : i32
    return %c0_i32, %arg0 : i32, i32
  }
  func.func @transform_1(%arg0: i32) -> (i32, i32) {
    %c0_i32 = arith.constant 0 : i32
    %c0_i32_0 = arith.constant 0 : i32
    return %c0_i32, %arg0 : i32, i32
  }
  func.func @transform_2(%arg0: i32) -> (i32, i32) {
    %c0_i32 = arith.constant 0 : i32
    %c0_i32_0 = arith.constant 0 : i32
    %c0_i32_1 = arith.constant 0 : i32
    return %c0_i32, %c0_i32_0 : i32, i32
  }
  func.func @transform_3(%arg0: i32) -> (i32, i32) {
    %c0_i32 = arith.constant 0 : i32
    %c0_i32_0 = arith.constant 0 : i32
    %c0_i32_1 = arith.constant 0 : i32
    return %c0_i32, %c0_i32_0 : i32, i32
  }
  func.func @transform_4(%arg0: i32) -> (i32, i32) {
    %c0_i32 = arith.constant 0 : i32
    %c0_i32_0 = arith.constant 0 : i32
    %c0_i32_1 = arith.constant 0 : i32
    return %c0_i32, %c0_i32_0 : i32, i32
  }
  func.func @transform_5(%arg0: i32) -> (i32, i32) {
    %c0_i32 = arith.constant 0 : i32
    %c0_i32_0 = arith.constant 0 : i32
    %c0_i32_1 = arith.constant 0 : i32
    return %c0_i32, %c0_i32_0 : i32, i32
  }
  func.func @transform_6(%arg0: i32) -> (i32, i32) {
    %c0_i32 = arith.constant 0 : i32
    %c0_i32_0 = arith.constant 0 : i32
    %c0_i32_1 = arith.constant 0 : i32
    return %c0_i32, %c0_i32_0 : i32, i32
  }
  func.func @transform_7(%arg0: i32) -> (i32, i32) {
    %c0_i32 = arith.constant 0 : i32
    %c0_i32_0 = arith.constant 0 : i32
    return %c0_i32, %arg0 : i32, i32
  }
}

</mosaic_0001>

<bundles_post_ra>
// kernel: policy_forward.1
= control target key start
LH: loop header
LB: loop body
LE: loop exit
PB: predicated region body
PF: predicated region fallthrough
CT: control target
= control target key end

     0   :  { %12 = vsyncpa [#allocation3], 0  ;;  %s3608_s24 = smov [#allocation2]   ;;  %s4880_s0 = inlined_call_operand.vmem [shape: bf16[24,16], index: 0, kind: input, shape index: {}]   ;;  %s4881_s1 = inlined_call_operand.vmem [shape: f32[4,16], index: 1, kind: input, shape index: {}]   ;;  %s4882_s2 = inlined_call_operand.vmem [shape: bf16[512,24], index: 2, kind: input, shape index: {}]   ;;  %s4883_s3 = inlined_call_operand.hbm [shape: bf16[512,512], index: 3, kind: input, shape index: {}]   ;;  %s4884_s4 = inlined_call_operand.vmem [shape: bf16[8,512], index: 4, kind: input, shape index: {}]   ;;  %s4885_s5 = inlined_call_operand.vmem [shape: f32[512,2], index: 5, kind: input, shape index: {}]   ;;  %s4886_s6 = inlined_call_operand.vmem [shape: f32[8,1], index: 6, kind: input, shape index: {}]   ;;  %s4887_s7 = inlined_call_operand.vmem [shape: f32[8,16], index: 7, kind: output, shape index: {}]  }
   0x1   :  { %s24_s25 = sshll.u32 %s3608_s24, 4  ;;  %s25_s25 = int_to_ptr.vmem [resolvable:$true] %s24_s25 }
   0x2   :  { %s3594_s26 = scalar_lea.vmem %s25_s25, 16384  ;;  %p3599_p1 = scmp.lt.s32.totalorder %s25_s25, %s25_s25 }
   0x3   :  { %p3595_p0 = scmp.ne.s32.totalorder %s25_s25, %s3594_s26  ;;  %p3600_p2 = scmp.lt.s32.totalorder %s3594_s26, %s3594_s26 }
   0x5   :  { %p3601_p3 = por %p3600_p2, %p3599_p1 }
   0x7   :  { %p3602_p4 = pnand %p3601_p3, %p3595_p0 }
   0x9   :  { %3605 = shalt.err (!%p3602_p4)
}
   0xa   :  { %s3609_s27 = smov 256   ;;  %s3610_s28 = smov 16  }
   0xb   :  { %30 = dma.hbm_to_vmem [thread:$0]  %s4883_s3, 16384, %s25_s25, [#allocation3], %s3609_s27, %s3609_s27, %s3610_s28  }
   0xc   :  { %3606 = dma.done.wait [#allocation3], 16384  }
   0xd   :  { %3607 = vsyncadd [#allocation3], 4294950912  ;;  %v4888_v0 = vmov 0   ;;  %v3661_v1 = vld [vmem:[%s4885_s5 + $0x170] sm:$0xff]  ;;  %vm758_vm0 = vcmask 1043456   ;;  %v3676_v4 = vld [vmem:[%s4885_s5 + $0x178] sm:$0xff] }
   0xe   :  { %3345 = vset.pattern.permute.xlu1 %v4888_v0  ;;  %3344 = vset.pattern.permute.xlu0 %v4888_v0  ;;  %v3666_v2 = vld [vmem:[%s4885_s5 + $0x70] sm:$0xff]  ;;  %v3350_v3 = vld [vmem:[%s4880_s0 + $0x8] ss:$0 sps:$4 sm:$0xff]   ;;  %v3681_v5 = vld [vmem:[%s4885_s5 + $0x78] sm:$0xff]  ;;  %vm661_vm1 = vcmask 195584   ;;  %vm2980_vm3 = vcmask 125952  }
   0xf   :  { %404 = vperm.xlu1 %3345, %v3661_v1   ;;  %244 = vperm.xlu0 %3344, %v3666_v2   ;;  %v3351_v6 = vld [vmem:[%s4880_s0] sm:$0xff]   ;;  %v760_v7 = vsel %vm758_vm0, %v3350_v3, 0  ;;  %v3689_v8 = vld [vmem:[%s4885_s5 + $0x68] sm:$0xff]  ;;  %v3356_v16 = vld [vmem:[%s4882_s2 + $0x10] sm:$0xff]  }
  0x10   :  { %3337 = vmatprep.subr.msk.bf16.mxu0 %vm758_vm0, %v3350_v3  ;;  %3338 = vmatprep.subr.msk.bf16.mxu1 %vm758_vm0, %v3350_v3  ;;  %v3352_v9 = vld [vmem:[%s4882_s2] sm:$0xff]   ;;  %v3354_v12 = vld [vmem:[%s4882_s2 + $0x8] sm:$0xff]   ;;  %v3357_v17 = vld [vmem:[%s4882_s2 + $0x90] sm:$0xff]  }
  0x11   :  { %3266 = vmatpush3.bf16.msra.mxu0 %v760_v7  ;;  %3335 = vmatpush3.bf16.msra.mxu1 %v760_v7  ;;  %v3353_v10 = vld [vmem:[%s4882_s2 + $0x80] sm:$0xff]   ;;  %v3355_v13 = vld [vmem:[%s4882_s2 + $0x88] sm:$0xff]   ;;  %v3741_v18 = vld [vmem:[%s4885_s5 + $0x58] sm:$0xff] }
  0x12   :  { %3267 = vmatprep.subr.bf16.mxu0 %v3351_v6  ;;  %3334 = vmatprep.subr.bf16.mxu1 %v3351_v6  ;;  %v3702_v11 = vld [vmem:[%s4885_s5 + $0x60] sm:$0xff]  ;;  %v3715_v14 = vld [vmem:[%s4885_s5 + $0x168] sm:$0xff]  ;;  %v3746_v19 = vld [vmem:[%s4885_s5 + $0x50] sm:$0xff] }
  0x13   :  { %409 = vperm.xlu1 %3345, %v3676_v4   ;;  %249 = vperm.xlu0 %3344, %v3681_v5   ;;  %v3720_v15 = vld [vmem:[%s4885_s5 + $0x160] sm:$0xff]  ;;  %v3358_v20 = vld [vmem:[%s4882_s2 + $0x18] sm:$0xff]   ;;  %v3770_v25 = vld [vmem:[%s4885_s5 + $0x150] sm:$0xff] }
  0x14   :  { %3269 = vmatprep.mubr.msk.bf16.mxu0 %vm661_vm1, %v3352_v9  ;;  %3301 = vmatprep.mubr.msk.bf16.mxu1 %vm661_vm1, %v3353_v10  ;;  %v3359_v21 = vld [vmem:[%s4882_s2 + $0x98] sm:$0xff]   ;;  %v3360_v22 = vld [vmem:[%s4882_s2 + $0x20] sm:$0xff]   ;;  %v3781_v26 = vld [vmem:[%s4885_s5 + $0x48] sm:$0xff] }
  0x15   :  { %3268 = vmatpush3.bf16.msra.mxu0 %v3351_v6  ;;  %3336 = vmatpush3.bf16.msra.mxu1 %v3351_v6  ;;  %v3361_v23 = vld [vmem:[%s4882_s2 + $0xa0] sm:$0xff]   ;;  %v3765_v24 = vld [vmem:[%s4885_s5 + $0x158] sm:$0xff]  ;;  %v3362_v28 = vld [vmem:[%s4882_s2 + $0x28] sm:$0xff]  }
  0x16   :  { %2171 = vmatprep.subr.bf16.mxu1 %v4888_v0  ;;  %2460 = vmatprep.subr.bf16.mxu0 %v4888_v0  ;;  %v3786_v27 = vld [vmem:[%s4885_s5 + $0x40] sm:$0xff]  ;;  %v3363_v29 = vld [vmem:[%s4882_s2 + $0xa8] sm:$0xff]   ;;  %v3364_v30 = vld [vmem:[%s4882_s2 + $0x30] sm:$0xff]  }
  0x17   :  { %239 = vperm.xlu1 %3345, %v3689_v8   ;;  %234 = vperm.xlu0 %3344, %v3702_v11   ;;  %v3365_v31 = vld [vmem:[%s4882_s2 + $0xb0] sm:$0xff]   ;;  %v3805_v32 = vld [vmem:[%s4885_s5 + $0x148] sm:$0xff]  ;;  %v3810_v33 = vld [vmem:[%s4885_s5 + $0x140] sm:$0xff] }
  0x18   :  { %3270 = vmatmul.mubr.msk.bf16.vlgmr.msra.gmra.mxu0 %vm661_vm1, %v3354_v12  ;;  %3302 = vmatmul.mubr.msk.bf16.vlgmr.msra.gmra.mxu1 %vm661_vm1, %v3355_v13  ;;  %v3821_v34 = vld [vmem:[%s4885_s5 + $0x38] sm:$0xff]  ;;  %v3826_v35 = vld [vmem:[%s4885_s5 + $0x30] sm:$0xff]  ;;  %v3368_v38 = vld [vmem:[%s4882_s2 + $0x40] sm:$0xff]  }
  0x19   :  { %3273 = vmatprep.mubr.msk.bf16.mxu0 %vm661_vm1, %v3356_v16  ;;  %3305 = vmatprep.mubr.msk.bf16.mxu1 %vm661_vm1, %v3357_v17  ;;  %v3366_v36 = vld [vmem:[%s4882_s2 + $0x38] sm:$0xff]   ;;  %v3369_v39 = vld [vmem:[%s4882_s2 + $0xc0] sm:$0xff]   ;;  %v3850_v41 = vld [vmem:[%s4885_s5 + $0x130] sm:$0xff] }
  0x1a   :  { %v3367_v37 = vld [vmem:[%s4882_s2 + $0xb8] sm:$0xff]   ;;  %v3861_v42 = vld [vmem:[%s4885_s5 + $0x28] sm:$0xff]  ;;  %v3866_v43 = vld [vmem:[%s4885_s5 + $0x20] sm:$0xff] }
  0x1b   :  { %399 = vperm.xlu1 %3345, %v3715_v14   ;;  %394 = vperm.xlu0 %3344, %v3720_v15   ;;  %v3845_v40 = vld [vmem:[%s4885_s5 + $0x138] sm:$0xff]  ;;  %v3370_v44 = vld [vmem:[%s4882_s2 + $0x48] sm:$0xff]   ;;  %v3372_v46 = vld [vmem:[%s4882_s2 + $0x50] sm:$0xff]  }
  0x1c   :  { %v3371_v45 = vld [vmem:[%s4882_s2 + $0xc8] sm:$0xff]   ;;  %v3373_v47 = vld [vmem:[%s4882_s2 + $0xd0] sm:$0xff]   ;;  %v3890_v49 = vld [vmem:[%s4885_s5 + $0x120] sm:$0xff] }
  0x1d   :  { %v3885_v48 = vld [vmem:[%s4885_s5 + $0x128] sm:$0xff]  ;;  %v3901_v50 = vld [vmem:[%s4885_s5 + $0x18] sm:$0xff]  ;;  %v3906_v51 = vld [vmem:[%s4885_s5 + $0x10] sm:$0xff] }
  0x1e   :  { %v3374_v52 = vld [vmem:[%s4882_s2 + $0x58] sm:$0xff]   ;;  %v3376_v54 = vld [vmem:[%s4882_s2 + $0x60] sm:$0xff]   ;;  %v3930_v57 = vld [vmem:[%s4885_s5 + $0x110] sm:$0xff] }
  0x1f   :  { %229 = vperm.xlu1 %3345, %v3741_v18   ;;  %224 = vperm.xlu0 %3344, %v3746_v19   ;;  %v3375_v53 = vld [vmem:[%s4882_s2 + $0xd8] sm:$0xff]   ;;  %v3377_v55 = vld [vmem:[%s4882_s2 + $0xe0] sm:$0xff]   ;;  %v3941_v58 = vld [vmem:[%s4885_s5 + $0x8] sm:$0xff] }
  0x20   :  { %3274 = vmatmul.mubr.msk.bf16.gmra.mxu0 %vm661_vm1, %v3358_v20  ;;  %3306 = vmatmul.mubr.msk.bf16.gmra.mxu1 %vm661_vm1, %v3359_v21  ;;  %v3925_v56 = vld [vmem:[%s4885_s5 + $0x118] sm:$0xff]  ;;  %4900 = vst [vmem:[#allocation6_spill] sm:$0xff] %v3941_v58  ;;  %v3946_v59 = vld [vmem:[%s4885_s5] sm:$0xff]  ;;  %v3378_v60 = vld [vmem:[%s4882_s2 + $0x68] sm:$0xff]  }
  0x21   :  { %3277 = vmatprep.mubr.msk.bf16.mxu0 %vm661_vm1, %v3360_v22  ;;  %3309 = vmatprep.mubr.msk.bf16.mxu1 %vm661_vm1, %v3361_v23  ;;  %4899 = vst [vmem:[#allocation5_spill] sm:$0xff] %v3925_v56  ;;  %4901 = vst [vmem:[#allocation7_spill] sm:$0xff] %v3946_v59  ;;  %v3379_v61 = vld [vmem:[%s4882_s2 + $0xe8] sm:$0xff]   ;;  %v3380_v62 = vld [vmem:[%s4882_s2 + $0x70] sm:$0xff]  }
  0x22   :  { %v3381_v63 = vld [vmem:[%s4882_s2 + $0xf0] sm:$0xff]   ;;  %v3963_v3 = vld [vmem:[%s4885_s5 + $0x108] sm:$0xff]  ;;  %v3968_v6 = vld [vmem:[%s4885_s5 + $0x100] sm:$0xff] }
  0x23   :  { %389 = vperm.xlu1 %3345, %v3765_v24   ;;  %384 = vperm.xlu0 %3344, %v3770_v25   ;;  %4902 = vst [vmem:[#allocation8_spill] sm:$0xff] %v3963_v3  ;;  %4903 = vst [vmem:[#allocation9_spill] sm:$0xff] %v3968_v6  ;;  %v3977_v7 = vld [vmem:[%s4885_s5 + $0xf8] sm:$0xff]  ;;  %v3982_v9 = vld [vmem:[%s4885_s5 + $0xf0] sm:$0xff] }
  0x24   :  { %v3382_v10 = vld [vmem:[%s4882_s2 + $0x78] sm:$0xff]   ;;  %v4002_v16 = vld [vmem:[%s4885_s5 + $0x1f0] sm:$0xff]  ;;  %v4011_v17 = vld [vmem:[%s4885_s5 + $0xe8] sm:$0xff] }
  0x25   :  { %v3383_v12 = vld [vmem:[%s4882_s2 + $0xf8] sm:$0xff]   ;;  %v4016_v20 = vld [vmem:[%s4885_s5 + $0xe0] sm:$0xff]  ;;  %v4023_v21 = vld [vmem:[%s4885_s5 + $0x1e8] sm:$0xff] }
  0x26   :  { %v3997_v13 = vld [vmem:[%s4885_s5 + $0x1f8] sm:$0xff]  ;;  %v4028_v22 = vld [vmem:[%s4885_s5 + $0x1e0] sm:$0xff] }
  0x27   :  { %219 = vperm.xlu1 %3345, %v3781_v26   ;;  %214 = vperm.xlu0 %3344, %v3786_v27   ;;  %v4035_v23 = vld [vmem:[%s4885_s5 + $0xd8] sm:$0xff]  ;;  %v4174_v0 = vld [vmem:[%s4885_s5 + $0x180] sm:$0xff] }
  0x28   :  { %3278 = vmatmul.mubr.msk.bf16.gmra.mxu0 %vm661_vm1, %v3362_v28  ;;  %3310 = vmatmul.mubr.msk.bf16.gmra.mxu1 %vm661_vm1, %v3363_v29  ;;  %v4040_v28 = vld [vmem:[%s4885_s5 + $0xd0] sm:$0xff]  ;;  %v4047_v29 = vld [vmem:[%s4885_s5 + $0x1d8] sm:$0xff]  ;;  %4907 = vst [vmem:[#allocation13_spill] sm:$0xff] %v4174_v0 }
  0x29   :  { %3281 = vmatprep.mubr.msk.bf16.mxu0 %vm661_vm1, %v3364_v30  ;;  %3313 = vmatprep.mubr.msk.bf16.mxu1 %vm661_vm1, %v3365_v31  ;;  %v4052_v30 = vld [vmem:[%s4885_s5 + $0x1d0] sm:$0xff]  ;;  %v4059_v31 = vld [vmem:[%s4885_s5 + $0xc8] sm:$0xff] }
  0x2b   :  { %379 = vperm.xlu1 %3345, %v3805_v32   ;;  %374 = vperm.xlu0 %3344, %v3810_v33  }
  0x2f   :  { %209 = vperm.xlu1 %3345, %v3821_v34   ;;  %204 = vperm.xlu0 %3344, %v3826_v35  }
  0x30   :  { %3282 = vmatmul.mubr.msk.bf16.gmra.mxu0 %vm661_vm1, %v3366_v36  ;;  %3314 = vmatmul.mubr.msk.bf16.gmra.mxu1 %vm661_vm1, %v3367_v37  ;;  %v4064_v36 = vld [vmem:[%s4885_s5 + $0xc0] sm:$0xff]  ;;  %v4071_v37 = vld [vmem:[%s4885_s5 + $0x1c8] sm:$0xff] }
  0x31   :  { %3285 = vmatprep.mubr.msk.bf16.mxu0 %vm661_vm1, %v3368_v38  ;;  %3317 = vmatprep.mubr.msk.bf16.mxu1 %vm661_vm1, %v3369_v39  ;;  %v4076_v38 = vld [vmem:[%s4885_s5 + $0x1c0] sm:$0xff]  ;;  %v4083_v39 = vld [vmem:[%s4885_s5 + $0xb8] sm:$0xff] }
  0x33   :  { %369 = vperm.xlu1 %3345, %v3845_v40   ;;  %364 = vperm.xlu0 %3344, %v3850_v41  }
  0x37   :  { %199 = vperm.xlu1 %3345, %v3861_v42   ;;  %194 = vperm.xlu0 %3344, %v3866_v43  }
  0x38   :  { %3286 = vmatmul.mubr.msk.bf16.gmra.mxu0 %vm661_vm1, %v3370_v44  ;;  %3318 = vmatmul.mubr.msk.bf16.gmra.mxu1 %vm661_vm1, %v3371_v45  ;;  %v4088_v44 = vld [vmem:[%s4885_s5 + $0xb0] sm:$0xff]  ;;  %v4097_v45 = vld [vmem:[%s4885_s5 + $0x1b8] sm:$0xff] }
  0x39   :  { %3289 = vmatprep.mubr.msk.bf16.mxu0 %vm661_vm1, %v3372_v46  ;;  %3321 = vmatprep.mubr.msk.bf16.mxu1 %vm661_vm1, %v3373_v47  ;;  %v4102_v46 = vld [vmem:[%s4885_s5 + $0x1b0] sm:$0xff]  ;;  %v4109_v47 = vld [vmem:[%s4885_s5 + $0xa8] sm:$0xff] }
  0x3b   :  { %359 = vperm.xlu1 %3345, %v3885_v48   ;;  %354 = vperm.xlu0 %3344, %v3890_v49  }
  0x3f   :  { %189 = vperm.xlu1 %3345, %v3901_v50   ;;  %184 = vperm.xlu0 %3344, %v3906_v51  }
  0x40   :  { %3290 = vmatmul.mubr.msk.bf16.gmra.mxu0 %vm661_vm1, %v3374_v52  ;;  %3322 = vmatmul.mubr.msk.bf16.gmra.mxu1 %vm661_vm1, %v3375_v53  ;;  %v4114_v52 = vld [vmem:[%s4885_s5 + $0xa0] sm:$0xff]  ;;  %v4121_v53 = vld [vmem:[%s4885_s5 + $0x1a8] sm:$0xff] }
  0x41   :  { %3293 = vmatprep.mubr.msk.bf16.mxu0 %vm661_vm1, %v3376_v54  ;;  %3325 = vmatprep.mubr.msk.bf16.mxu1 %vm661_vm1, %v3377_v55  ;;  %v4126_v54 = vld [vmem:[%s4885_s5 + $0x1a0] sm:$0xff]  ;;  %v4133_v55 = vld [vmem:[%s4885_s5 + $0x98] sm:$0xff] }
  0x43   :  { %349 = vperm.xlu1 %3345, %v3925_v56   ;;  %344 = vperm.xlu0 %3344, %v3930_v57  }
  0x47   :  { %179 = vperm.xlu1 %3345, %v3941_v58   ;;  %174 = vperm.xlu0 %3344, %v3946_v59  }
  0x48   :  { %3294 = vmatmul.mubr.msk.bf16.gmra.mxu0 %vm661_vm1, %v3378_v60  ;;  %3326 = vmatmul.mubr.msk.bf16.gmra.mxu1 %vm661_vm1, %v3379_v61  ;;  %v4138_v60 = vld [vmem:[%s4885_s5 + $0x90] sm:$0xff]  ;;  %v4145_v61 = vld [vmem:[%s4885_s5 + $0x198] sm:$0xff] }
  0x49   :  { %3297 = vmatprep.mubr.msk.bf16.mxu0 %vm661_vm1, %v3380_v62  ;;  %3329 = vmatprep.mubr.msk.bf16.mxu1 %vm661_vm1, %v3381_v63  ;;  %v4150_v62 = vld [vmem:[%s4885_s5 + $0x190] sm:$0xff]  ;;  %v4157_v63 = vld [vmem:[%s4885_s5 + $0x88] sm:$0xff] }
  0x4a   :  { %4904 = vst [vmem:[#allocation10_spill] sm:$0xff] %v4157_v63 }
  0x4b   :  { %339 = vperm.xlu1 %3345, %v3963_v3   ;;  %334 = vperm.xlu0 %3344, %v3968_v6  }
  0x4f   :  { %329 = vperm.xlu1 %3345, %v3977_v7   ;;  %324 = vperm.xlu0 %3344, %v3982_v9  }
  0x50   :  { %3298 = vmatmul.mubr.msk.bf16.gmra.mxu0 %vm661_vm1, %v3382_v10  ;;  %3330 = vmatmul.mubr.msk.bf16.gmra.mxu1 %vm661_vm1, %v3383_v12  ;;  %v4162_v10 = vld [vmem:[%s4885_s5 + $0x80] sm:$0xff]  ;;  %v4169_v12 = vld [vmem:[%s4885_s5 + $0x188] sm:$0xff] }
  0x51   :  { %4905 = vst [vmem:[#allocation11_spill] sm:$0xff] %v4162_v10  ;;  %4906 = vst [vmem:[#allocation12_spill] sm:$0xff] %v4169_v12 }
  0x53   :  { %489 = vperm.xlu1 %3345, %v3997_v13   ;;  %484 = vperm.xlu0 %3344, %v4002_v16  }
  0x57   :  { %319 = vperm.xlu1 %3345, %v4011_v17   ;;  %314 = vperm.xlu0 %3344, %v4016_v20  }
  0x5b   :  { %479 = vperm.xlu1 %3345, %v4023_v21   ;;  %474 = vperm.xlu0 %3344, %v4028_v22  }
  0x5f   :  { %309 = vperm.xlu1 %3345, %v4035_v23   ;;  %304 = vperm.xlu0 %3344, %v4040_v28  }
  0x63   :  { %469 = vperm.xlu1 %3345, %v4047_v29   ;;  %464 = vperm.xlu0 %3344, %v4052_v30  }
  0x67   :  { %299 = vperm.xlu1 %3345, %v4059_v31   ;;  %294 = vperm.xlu0 %3344, %v4064_v36  }
  0x6b   :  { %459 = vperm.xlu1 %3345, %v4071_v37   ;;  %454 = vperm.xlu0 %3344, %v4076_v38  }
  0x6f   :  { %289 = vperm.xlu1 %3345, %v4083_v39   ;;  %284 = vperm.xlu0 %3344, %v4088_v44  }
  0x73   :  { %449 = vperm.xlu1 %3345, %v4097_v45   ;;  %444 = vperm.xlu0 %3344, %v4102_v46  }
  0x77   :  { %279 = vperm.xlu1 %3345, %v4109_v47   ;;  %274 = vperm.xlu0 %3344, %v4114_v52  }
  0x7b   :  { %439 = vperm.xlu1 %3345, %v4121_v53   ;;  %434 = vperm.xlu0 %3344, %v4126_v54  }
  0x7f   :  { %269 = vperm.xlu1 %3345, %v4133_v55   ;;  %264 = vperm.xlu0 %3344, %v4138_v60  }
  0x83   :  { %429 = vperm.xlu1 %3345, %v4145_v61   ;;  %424 = vperm.xlu0 %3344, %v4150_v62  }
  0x87   :  { %259 = vperm.xlu1 %3345, %v4157_v63   ;;  %254 = vperm.xlu0 %3344, %v4162_v10   ;;  %v3612_v63 = vmov 1  }
  0x8a   :  { %v4176_v3 = vpop.permute.xlu1 %404  ;;  %v4178_v6 = vpop.permute.xlu0 %244 }
  0x8b   :  { %419 = vperm.xlu1 %3345, %v4169_v12   ;;  %414 = vperm.xlu0 %3344, %v4174_v0  }
  0x8e   :  { %v4182_v58 = vpop.permute.xlu1 %409  ;;  %v4184_v59 = vpop.permute.xlu0 %249 }
  0x8f   :  { %3347 = vset.pattern.permute.xlu1 %v3612_v63  ;;  %3346 = vset.pattern.permute.xlu0 %v3612_v63 }
  0x90   :  { %1400 = vperm.xlu1 %3347, %v3977_v7   ;;  %1396 = vperm.xlu0 %3346, %v3982_v9  }
  0x92   :  { %v4188_v10 = vpop.permute.xlu1 %239  ;;  %v4190_v56 = vpop.permute.xlu0 %234 }
  0x94   :  { %1332 = vperm.xlu1 %3347, %v3666_v2   ;;  %1336 = vperm.xlu0 %3346, %v3681_v5  }
  0x96   :  { %v4194_v12 = vpop.permute.xlu1 %399  ;;  %v4196_v0 = vpop.permute.xlu0 %394 }
  0x98   :  { %1524 = vperm.xlu1 %3347, %v4002_v16   ;;  %1528 = vperm.xlu0 %3346, %v3997_v13  }
  0x9a   :  { %v4200_v63 = vpop.permute.xlu1 %229  ;;  %v4202_v7 = vpop.permute.xlu0 %224 }
  0x9c   :  { %1460 = vperm.xlu1 %3347, %v3661_v1   ;;  %1464 = vperm.xlu0 %3346, %v3676_v4  }
  0x9e   :  { %v4206_v9 = vpop.permute.xlu1 %389  ;;  %v4208_v2 = vpop.permute.xlu0 %384 }
  0xa0   :  { %1388 = vperm.xlu1 %3347, %v4016_v20   ;;  %1392 = vperm.xlu0 %3346, %v4011_v17  }
  0xa2   :  { %v4212_v5 = vpop.permute.xlu1 %219  ;;  %v4214_v16 = vpop.permute.xlu0 %214 }
  0xa4   :  { %1324 = vperm.xlu1 %3347, %v3702_v11   ;;  %1328 = vperm.xlu0 %3346, %v3689_v8  }
  0xa6   :  { %v4218_v13 = vpop.permute.xlu1 %379  ;;  %v4220_v1 = vpop.permute.xlu0 %374 }
  0xa8   :  { %1516 = vperm.xlu1 %3347, %v4028_v22   ;;  %1520 = vperm.xlu0 %3346, %v4023_v21  }
  0xaa   :  { %v4224_v4 = vpop.permute.xlu1 %209  ;;  %v4226_v20 = vpop.permute.xlu0 %204 }
  0xac   :  { %1452 = vperm.xlu1 %3347, %v3720_v15   ;;  %1456 = vperm.xlu0 %3346, %v3715_v14   ;;  %v3386_v14 = vld [vmem:[#allocation2 + $0x4] ss:$16 sps:$4 sm:$0xff]  }
  0xad   :  { %2203 = vmatprep.mubr.bf16.mxu1 %v3386_v14 }
  0xae   :  { %v4230_v17 = vpop.permute.xlu1 %369  ;;  %v4232_v11 = vpop.permute.xlu0 %364 }
  0xb0   :  { %1380 = vperm.xlu1 %3347, %v4040_v28   ;;  %1384 = vperm.xlu0 %3346, %v4035_v23  }
  0xb2   :  { %v4236_v8 = vpop.permute.xlu1 %199  ;;  %v4238_v22 = vpop.permute.xlu0 %194 }
  0xb3   :  { %4908 = vst [vmem:[#allocation14_spill] sm:$0xff] %v4236_v8  ;;  %v3389_v8 = vld [vmem:[#allocation2 + $0xc] ss:$16 sps:$4 sm:$0xff]  }
  0xb4   :  { %1316 = vperm.xlu1 %3347, %v3746_v19   ;;  %1320 = vperm.xlu0 %3346, %v3741_v18  }
  0xb5   :  { %2492 = vmatprep.mubr.bf16.mxu0 %v3389_v8 }
  0xb6   :  { %v4242_v21 = vpop.permute.xlu1 %359  ;;  %v4244_v15 = vpop.permute.xlu0 %354 }
  0xb8   :  { %1508 = vperm.xlu1 %3347, %v4052_v30   ;;  %1512 = vperm.xlu0 %3346, %v4047_v29  }
  0xba   :  { %v4248_v28 = vpop.permute.xlu1 %189  ;;  %v4250_v23 = vpop.permute.xlu0 %184 }
  0xbc   :  { %1444 = vperm.xlu1 %3347, %v3770_v25   ;;  %1448 = vperm.xlu0 %3346, %v3765_v24  }
  0xbe   :  { %v4254_v18 = vpop.permute.xlu1 %349  ;;  %v4256_v19 = vpop.permute.xlu0 %344 }
  0xbf   :  { %4909 = vst [vmem:[#allocation15_spill] sm:$0xff] %v4256_v19 }
  0xc0   :  { %1372 = vperm.xlu1 %3347, %v4064_v36   ;;  %1376 = vperm.xlu0 %3346, %v4059_v31  }
  0xc2   :  { %v4262_v29 = vpop.permute.xlu1 %179  ;;  %v4264_v30 = vpop.permute.xlu0 %174 }
  0xc3   :  { %4910 = vst [vmem:[#allocation16_spill] sm:$0xff] %v4262_v29  ;;  %4911 = vst [vmem:[#allocation17_spill] sm:$0xff] %v4264_v30 }
  0xc4   :  { %1308 = vperm.xlu1 %3347, %v3786_v27   ;;  %1312 = vperm.xlu0 %3346, %v3781_v26  }
  0xc6   :  { %v4268_v24 = vpop.permute.xlu1 %339  ;;  %v4270_v25 = vpop.permute.xlu0 %334 }
  0xc7   :  { %4912 = vst [vmem:[#allocation18_spill] sm:$0xff] %v4268_v24  ;;  %4913 = vst [vmem:[#allocation19_spill] sm:$0xff] %v4270_v25 }
  0xc8   :  { %1500 = vperm.xlu1 %3347, %v4076_v38   ;;  %1504 = vperm.xlu0 %3346, %v4071_v37  }
  0xca   :  { %v4276_v26 = vpop.permute.xlu1 %329  ;;  %v4278_v27 = vpop.permute.xlu0 %324 }
  0xcb   :  { %4914 = vst [vmem:[#allocation20_spill] sm:$0xff] %v4276_v26  ;;  %4915 = vst [vmem:[#allocation21_spill] sm:$0xff] %v4278_v27 }
  0xcc   :  { %1436 = vperm.xlu1 %3347, %v3810_v33   ;;  %1440 = vperm.xlu0 %3346, %v3805_v32  }
  0xce   :  { %v4282_v31 = vpop.permute.xlu1 %489  ;;  %v4284_v36 = vpop.permute.xlu0 %484 }
  0xcf   :  { %4916 = vst [vmem:[#allocation22_spill] sm:$0xff] %v4282_v31  ;;  %4917 = vst [vmem:[#allocation23_spill] sm:$0xff] %v4284_v36 }
  0xd0   :  { %1364 = vperm.xlu1 %3347, %v4088_v44   ;;  %1368 = vperm.xlu0 %3346, %v4083_v39  }
  0xd2   :  { %v4302_v39 = vpop.permute.xlu1 %319  ;;  %v4304_v44 = vpop.permute.xlu0 %314 }
  0xd3   :  { %4922 = vst [vmem:[#allocation28_spill] sm:$0xff] %v4302_v39  ;;  %4923 = vst [vmem:[#allocation29_spill] sm:$0xff] %v4304_v44 }
  0xd4   :  { %1300 = vperm.xlu1 %3347, %v3826_v35   ;;  %1304 = vperm.xlu0 %3346, %v3821_v34  }
  0xd6   :  { %v4322_v39 = vpop.permute.xlu0 %474 }
  0xd7   :  { %4927 = vst [vmem:[#allocation33_spill] sm:$0xff] %v4322_v39 }
  0xd8   :  { %1492 = vperm.xlu1 %3347, %v4102_v46   ;;  %v4287_v33 = vpop.f32.mrf.mxu0  ;;  %v4289_v32 = vpop.f32.mrf.mxu1  ;;  %1496 = vperm.xlu0 %3346, %v4097_v45  }
  0xd9   :  { %4918 = vst [vmem:[#allocation24_spill] sm:$0xff] %v4287_v33  ;;  %4919 = vst [vmem:[#allocation25_spill] sm:$0xff] %v4289_v32 }
  0xda   :  { %v4292_v37 = vpop.f32.mrf.mxu0  ;;  %v4294_v38 = vpop.f32.mrf.mxu1 }
  0xdb   :  { %4920 = vst [vmem:[#allocation26_spill] sm:$0xff] %v4292_v37  ;;  %4921 = vst [vmem:[#allocation27_spill] sm:$0xff] %v4294_v38  ;;  %v4338_v39 = vpop.permute.xlu0 %304 }
  0xdc   :  { %1428 = vperm.xlu1 %3347, %v3850_v41   ;;  %v4297_v35 = vpop.f32.mrf.mxu0  ;;  %v4299_v34 = vpop.f32.mrf.mxu1  ;;  %1432 = vperm.xlu0 %3346, %v3845_v40   ;;  %4929 = vst [vmem:[#allocation35_spill] sm:$0xff] %v4338_v39 }
  0xdd   :  { %v4320_v40 = vpop.permute.xlu1 %479 }
  0xde   :  { %v4306_v46 = vpop.f32.mrf.mxu0  ;;  %v4308_v8 = vpop.f32.mrf.mxu1  ;;  %4926 = vst [vmem:[#allocation32_spill] sm:$0xff] %v4320_v40 }
  0xdf   :  { %4924 = vst [vmem:[#allocation30_spill] sm:$0xff] %v4306_v46  ;;  %4925 = vst [vmem:[#allocation31_spill] sm:$0xff] %v4308_v8  ;;  %v4348_v8 = vpop.permute.xlu0 %464 }
  0xe0   :  { %1356 = vperm.xlu1 %3347, %v4114_v52   ;;  %v4311_v45 = vpop.f32.mrf.mxu0  ;;  %v4313_v14 = vpop.f32.mrf.mxu1  ;;  %1360 = vperm.xlu0 %3346, %v4109_v47   ;;  %4931 = vst [vmem:[#allocation37_spill] sm:$0xff] %v4348_v8 }
  0xe1   :  { %v4336_v40 = vpop.permute.xlu1 %309 }
  0xe2   :  { %v4316_v41 = vpop.f32.mrf.mxu0  ;;  %v4318_v31 = vpop.f32.mrf.mxu1  ;;  %4928 = vst [vmem:[#allocation34_spill] sm:$0xff] %v4336_v40 }
  0xe3   :  { %v4358_v8 = vpop.permute.xlu0 %294 }
  0xe4   :  { %1292 = vperm.xlu1 %3347, %v3866_v43   ;;  %v4325_v44 = vpop.f32.mrf.mxu0  ;;  %v4327_v26 = vpop.f32.mrf.mxu1  ;;  %1296 = vperm.xlu0 %3346, %v3861_v42  }
  0xe5   :  { %v4346_v30 = vpop.permute.xlu1 %469 }
  0xe6   :  { %v4330_v52 = vpop.f32.mrf.mxu0  ;;  %v4332_v36 = vpop.f32.mrf.mxu1  ;;  %4930 = vst [vmem:[#allocation36_spill] sm:$0xff] %v4346_v30 }
  0xe8   :  { %1484 = vperm.xlu1 %3347, %v4126_v54   ;;  %v3279_v47 = vpop.f32.mrf.mxu0  ;;  %v3311_v27 = vpop.f32.mrf.mxu1  ;;  %1488 = vperm.xlu0 %3346, %v4121_v53  }
  0xe9   :  { %v4356_v30 = vpop.permute.xlu1 %299 }
  0xea   :  { %v4340_v43 = vpop.f32.mrf.mxu0  ;;  %v4342_v38 = vpop.f32.mrf.mxu1  ;;  %4932 = vst [vmem:[#allocation38_spill] sm:$0xff] %v4356_v30 }
  0xec   :  { %1420 = vperm.xlu1 %3347, %v3890_v49   ;;  %v3280_v42 = vpop.f32.mrf.mxu0  ;;  %v3312_v25 = vpop.f32.mrf.mxu1  ;;  %1424 = vperm.xlu0 %3346, %v3885_v48  }
  0xee   :  { %v831_v37 = vpop.f32.mrf.mxu0  ;;  %v959_v54 = vpop.f32.mrf.mxu1 }
  0xf0   :  { %1348 = vperm.xlu1 %3347, %v4138_v60   ;;  %v3283_v53 = vpop.f32.mrf.mxu0  ;;  %v3315_v39 = vpop.f32.mrf.mxu1  ;;  %1352 = vperm.xlu0 %3346, %v4133_v55  }
  0xf1   :  { %v853_v40 = vadd.f32 %v3283_v53, %v4178_v6  ;;  %v981_v49 = vadd.f32 %v3315_v39, %v4176_v3 }
  0xf2   :  { %v844_v24 = vpop.f32.mrf.mxu0  ;;  %v972_v46 = vpop.f32.mrf.mxu1 }
  0xf3   :  { %v1065_v32 = vmax.f32 %v853_v40, 0.0  ;;  %v1097_v6 = vmax.f32 %v981_v49, 0.0  ;;  %v845_v3 = vadd.f32 %v844_v24, %v4190_v56  ;;  %v973_v39 = vadd.f32 %v972_v46, %v4196_v0 }
  0xf4   :  { %1284 = vperm.xlu1 %3347, %v3906_v51   ;;  %v3284_v48 = vpop.f32.mrf.mxu0  ;;  %v3316_v29 = vpop.f32.mrf.mxu1  ;;  %1288 = vperm.xlu0 %3346, %v3901_v50  }
  0xf5   :  { %v856_v60 = vadd.f32 %v3284_v48, %v4184_v59  ;;  %v984_v55 = vadd.f32 %v3316_v29, %v4182_v58  ;;  %v840_v59 = vadd.f32 %v3280_v42, %v4200_v63  ;;  %v968_v58 = vadd.f32 %v3312_v25, %v4206_v9 }
  0xf6   :  { %v847_v53 = vpop.f32.mrf.mxu0  ;;  %v975_v51 = vpop.f32.mrf.mxu1  ;;  %v837_v63 = vadd.f32 %v3279_v47, %v4202_v7  ;;  %v965_v9 = vadd.f32 %v3311_v27, %v4208_v2  ;;  %v1063_v25 = vmax.f32 %v845_v3, 0.0  ;;  %v1095_v42 = vmax.f32 %v973_v39, 0.0  ;;  %v4934_v27 = vld [vmem:[#allocation5_spill] sm:$0xff] }
  0xf7   :  { %v1066_v19 = vmax.f32 %v856_v60, 0.0  ;;  %v1098_v33 = vmax.f32 %v984_v55, 0.0  ;;  %v848_v50 = vadd.f32 %v847_v53, %v4188_v10  ;;  %v976_v30 = vadd.f32 %v975_v51, %v4194_v12  ;;  %v4378_v12 = vpop.permute.xlu1 %459  ;;  %v4935_v51 = vld [vmem:[#allocation11_spill] sm:$0xff] }
  0xf8   :  { %1476 = vperm.xlu1 %3347, %v4150_v62   ;;  %v4369_v29 = vpop.f32.mrf.mxu0  ;;  %v4371_v40 = vpop.f32.mrf.mxu1  ;;  %1480 = vperm.xlu0 %3346, %v4145_v61   ;;  %v1062_v61 = vmax.f32 %v840_v59, 0.0  ;;  %v1094_v48 = vmax.f32 %v968_v58, 0.0  ;;  %v960_v7 = vadd.f32 %v959_v54, %v4218_v13  ;;  %v1093_v55 = vmax.f32 %v965_v9, 0.0 }
  0xf9   :  { %v1122_v0 = vpack.c.bf16 %v1066_v19, %v1065_v32  ;;  %v1138_v56 = vpack.c.bf16 %v1098_v33, %v1097_v6  ;;  %v1064_v24 = vmax.f32 %v848_v50, 0.0  ;;  %v1096_v46 = vmax.f32 %v976_v30, 0.0  ;;  %v4380_v62 = vpop.permute.xlu0 %454  ;;  %v4936_v50 = vld [vmem:[#allocation10_spill] sm:$0xff] }
  0xfa   :  { %v4374_v49 = vpop.f32.mrf.mxu0  ;;  %v4376_v10 = vpop.f32.mrf.mxu1  ;;  %v832_v19 = vadd.f32 %v831_v37, %v4212_v5  ;;  %v4933_v32 = vmov 0   ;;  %v1061_v37 = vmax.f32 %v837_v63, 0.0  ;;  %v829_v6 = vadd.f32 %v4340_v43, %v4214_v16 }
  0xfb   :  { %2172 = vmatpush1.bf16.msra.mxu1 %v1122_v0  ;;  %2461 = vmatpush1.bf16.msra.mxu0 %v1138_v56  ;;  %v1121_v47 = vpack.c.bf16 %v1064_v24, %v1063_v25  ;;  %v1137_v2 = vpack.c.bf16 %v1096_v46, %v1095_v42  ;;  %v957_v3 = vadd.f32 %v4342_v38, %v4220_v1  ;;  %v4410_v39 = vpop.permute.xlu1 %289  ;;  %v1092_v38 = vmax.f32 %v960_v7, 0.0  ;;  %v4938_v25 = vld [vmem:[#allocation7_spill] sm:$0xff]  ;;  %v4939_v42 = vld [vmem:[#allocation6_spill] sm:$0xff] }
  0xfc   :  { %v4385_v30 = vpop.f32.mrf.mxu0  ;;  %v4387_v33 = vpop.f32.mrf.mxu1  ;;  %2173 = vmatprep.subr.bf16.mxu1 %v4933_v32  ;;  %2462 = vmatprep.subr.bf16.mxu0 %v4933_v32  ;;  %v824_v13 = vadd.f32 %v4325_v44, %v4224_v4  ;;  %v1120_v16 = vpack.c.bf16 %v1062_v61, %v1061_v37  ;;  %v1136_v43 = vpack.c.bf16 %v1094_v48, %v1093_v55  ;;  %v1060_v1 = vmax.f32 %v832_v19, 0.0  ;;  %v4940_v55 = vld [vmem:[#allocation13_spill] sm:$0xff] }
  0xfd   :  { %1412 = vperm.xlu1 %3347, %v3930_v57   ;;  %1416 = vperm.xlu0 %3346, %v4934_v27   ;;  %v4412_v53 = vpop.permute.xlu0 %284  ;;  %v952_v4 = vadd.f32 %v4327_v26, %v4230_v17  ;;  %v821_v58 = vadd.f32 %v4311_v45, %v4226_v20  ;;  %v1059_v0 = vmax.f32 %v829_v6, 0.0  ;;  %v1091_v56 = vmax.f32 %v957_v3, 0.0  ;;  %v4937_v26 = vld [vmem:[#allocation14_spill] sm:$0xff]  ;;  %v4941_v6 = vld [vmem:[#allocation12_spill] sm:$0xff] }
  0xfe   :  { %v4394_v60 = vpop.f32.mrf.mxu0  ;;  %v4396_v5 = vpop.f32.mrf.mxu1  ;;  %v949_v24 = vadd.f32 %v4313_v14, %v4232_v11  ;;  %v1058_v17 = vmax.f32 %v824_v13, 0.0  ;;  %v816_v9 = vadd.f32 %v4330_v52, %v4937_v26  ;;  %v944_v11 = vadd.f32 %v4332_v36, %v4242_v21  ;;  %v4947_v26 = vld [vmem:[#allocation9_spill] sm:$0xff] }
  0xff   :  { %2174 = vmatpush1.bf16.msra.mxu1 %v1121_v47  ;;  %2463 = vmatpush1.bf16.msra.mxu0 %v1137_v2  ;;  %v1119_v20 = vpack.c.bf16 %v1060_v1, %v1059_v0  ;;  %v1135_v45 = vpack.c.bf16 %v1092_v38, %v1091_v56  ;;  %v1090_v61 = vmax.f32 %v952_v4, 0.0  ;;  %v1057_v48 = vmax.f32 %v821_v58, 0.0  ;;  %v4444_v47 = vpop.permute.xlu1 %449  ;;  %v4946_v0 = vld [vmem:[#allocation30_spill] sm:$0xff] }
 0x100   :  { %v4404_v57 = vpop.f32.mrf.mxu0  ;;  %v4406_v54 = vpop.f32.mrf.mxu1  ;;  %2175 = vmatprep.subr.bf16.mxu1 %v4933_v32  ;;  %2464 = vmatprep.subr.bf16.mxu0 %v4933_v32  ;;  %v813_v7 = vadd.f32 %v4316_v41, %v4238_v22  ;;  %v1089_v2 = vmax.f32 %v949_v24, 0.0  ;;  %v941_v27 = vadd.f32 %v4318_v31, %v4244_v15  ;;  %v808_v22 = vadd.f32 %v4297_v35, %v4248_v28  ;;  %v4943_v28 = vld [vmem:[#allocation15_spill] sm:$0xff]  ;;  %v4944_v35 = vld [vmem:[#allocation25_spill] sm:$0xff] }
 0x101   :  { %1340 = vperm.xlu1 %3347, %v4935_v51   ;;  %1344 = vperm.xlu0 %3346, %v4936_v50   ;;  %v4446_v52 = vpop.permute.xlu0 %444  ;;  %v1118_v36 = vpack.c.bf16 %v1058_v17, %v1057_v48  ;;  %v1056_v41 = vmax.f32 %v816_v9, 0.0  ;;  %v936_v15 = vadd.f32 %v4299_v34, %v4254_v18  ;;  %v1088_v3 = vmax.f32 %v944_v11, 0.0  ;;  %v4945_v34 = vld [vmem:[#allocation16_spill] sm:$0xff] }
 0x102   :  { %v4418_v44 = vpop.f32.mrf.mxu0  ;;  %v4420_v59 = vpop.f32.mrf.mxu1  ;;  %v1134_v31 = vpack.c.bf16 %v1090_v61, %v1089_v2  ;;  %v1055_v38 = vmax.f32 %v813_v7, 0.0  ;;  %v933_v51 = vadd.f32 %v4944_v35, %v4943_v28  ;;  %v1087_v50 = vmax.f32 %v941_v27, 0.0  ;;  %v4950_v48 = vld [vmem:[#allocation8_spill] sm:$0xff]  ;;  %v4951_v2 = vld [vmem:[#allocation17_spill] sm:$0xff]  ;;  %v4952_v27 = vld [vmem:[#allocation26_spill] sm:$0xff] }
 0x103   :  { %2176 = vmatpush1.bf16.msra.mxu1 %v1120_v16  ;;  %2465 = vmatpush1.bf16.msra.mxu0 %v1136_v43  ;;  %v4942_v43 = vld [vmem:[#allocation24_spill] sm:$0xff]  ;;  %v1054_v18 = vmax.f32 %v808_v22, 0.0  ;;  %v800_v56 = vadd.f32 %v4946_v0, %v4945_v34  ;;  %v4477_v17 = vpop.permute.xlu1 %279  ;;  %v1086_v9 = vmax.f32 %v936_v15, 0.0  ;;  %v797_v22 = vadd.f32 %v4952_v27, %v4951_v2  ;;  %v4955_v28 = vld [vmem:[#allocation21_spill] sm:$0xff] }
 0x104   :  { %v4426_v46 = vpop.f32.mrf.mxu0  ;;  %v4428_v63 = vpop.f32.mrf.mxu1  ;;  %2177 = vmatprep.subr.bf16.mxu1 %v4933_v32  ;;  %2466 = vmatprep.subr.bf16.mxu0 %v4933_v32  ;;  %v805_v1 = vadd.f32 %v4942_v43, %v4250_v23  ;;  %v1117_v24 = vpack.c.bf16 %v1056_v41, %v1055_v38  ;;  %v4953_v41 = vld [vmem:[#allocation19_spill] sm:$0xff] }
 0x105   :  { %1276 = vperm.xlu1 %3347, %v4938_v25   ;;  %1280 = vperm.xlu0 %3346, %v4939_v42   ;;  %v4479_v23 = vpop.permute.xlu0 %274  ;;  %v1133_v42 = vpack.c.bf16 %v1088_v3, %v1087_v50  ;;  %v1052_v43 = vmax.f32 %v800_v56, 0.0  ;;  %v4956_v50 = vld [vmem:[#allocation23_spill] sm:$0xff] }
 0x106   :  { %v4438_v14 = vpop.f32.mrf.mxu0  ;;  %v4440_v19 = vpop.f32.mrf.mxu1  ;;  %v1053_v7 = vmax.f32 %v805_v1, 0.0 }
 0x107   :  { %2178 = vmatpush1.bf16.msra.mxu1 %v1119_v20  ;;  %2467 = vmatpush1.bf16.msra.mxu0 %v1135_v45  ;;  %v4948_v20 = vld [vmem:[#allocation18_spill] sm:$0xff]  ;;  %v4949_v45 = vld [vmem:[#allocation31_spill] sm:$0xff] }
 0x108   :  { %v4450_v37 = vpop.f32.mrf.mxu0  ;;  %v4452_v21 = vpop.f32.mrf.mxu1  ;;  %2179 = vmatprep.subr.bf16.mxu1 %v4933_v32  ;;  %2468 = vmatprep.subr.bf16.mxu0 %v4933_v32  ;;  %v928_v25 = vadd.f32 %v4949_v45, %v4948_v20  ;;  %v1116_v3 = vpack.c.bf16 %v1054_v18, %v1053_v7 }
 0x109   :  { %1468 = vperm.xlu1 %3347, %v4940_v55   ;;  %1472 = vperm.xlu0 %3346, %v4941_v6   ;;  %v4954_v55 = vld [vmem:[#allocation27_spill] sm:$0xff]  ;;  %v4502_v20 = vpop.permute.xlu0 %434 }
 0x10a   :  { %v4462_v13 = vpop.f32.mrf.mxu0  ;;  %v4464_v16 = vpop.f32.mrf.mxu1  ;;  %v925_v6 = vadd.f32 %v4954_v55, %v4953_v41  ;;  %v1084_v38 = vmax.f32 %v928_v25, 0.0  ;;  %v4957_v25 = vld [vmem:[#allocation20_spill] sm:$0xff] }
 0x10b   :  { %2180 = vmatpush1.bf16.msra.mxu1 %v1118_v36  ;;  %2469 = vmatpush1.bf16.msra.mxu0 %v1134_v31  ;;  %v1085_v36 = vmax.f32 %v933_v51, 0.0 }
 0x10c   :  { %v4470_v4 = vpop.f32.mrf.mxu0  ;;  %v4472_v58 = vpop.f32.mrf.mxu1  ;;  %2181 = vmatprep.subr.bf16.mxu1 %v4933_v32  ;;  %2470 = vmatprep.subr.bf16.mxu0 %v4933_v32  ;;  %v1083_v18 = vmax.f32 %v925_v6, 0.0 }
 0x10d   :  { %1404 = vperm.xlu1 %3347, %v4947_v26   ;;  %1408 = vperm.xlu0 %3346, %v4950_v48   ;;  %v1132_v1 = vpack.c.bf16 %v1086_v9, %v1085_v36  ;;  %v4500_v26 = vpop.permute.xlu1 %439  ;;  %v4958_v48 = vld [vmem:[#allocation22_spill] sm:$0xff]  ;;  %v4959_v36 = vld [vmem:[#allocation29_spill] sm:$0xff] }
 0x10e   :  { %v4485_v61 = vpop.f32.mrf.mxu0  ;;  %v4487_v11 = vpop.f32.mrf.mxu1  ;;  %v1131_v2 = vpack.c.bf16 %v1084_v38, %v1083_v18 }
 0x10f   :  { %2182 = vmatpush1.bf16.msra.mxu1 %v1117_v24  ;;  %2471 = vmatpush1.bf16.msra.mxu0 %v1133_v42  ;;  %v1051_v24 = vmax.f32 %v797_v22, 0.0  ;;  %v4513_v38 = vpop.permute.xlu0 %264 }
 0x110   :  { %v3299_v15 = vpop.f32.mrf.mxu0  ;;  %v3331_v31 = vpop.f32.mrf.mxu1  ;;  %2183 = vmatprep.subr.bf16.mxu1 %v4933_v32  ;;  %2472 = vmatprep.subr.bf16.mxu0 %v4933_v32 }
 0x111   :  { %3348 = vset.pattern.permute.xlu1 %v4933_v32  ;;  %v917_v35 = vadd.f32 %v3299_v15, %v4955_v28  ;;  %v1045_v51 = vadd.f32 %v3331_v31, %v4956_v50  ;;  %3349 = vset.pattern.permute.xlu0 %v4933_v32  ;;  %v1115_v9 = vpack.c.bf16 %v1052_v43, %v1051_v24  ;;  %v4961_v28 = vld [vmem:[#allocation32_spill] sm:$0xff]  ;;  %v4962_v43 = vld [vmem:[#allocation33_spill] sm:$0xff] }
 0x112   :  { %v908_v34 = vpop.f32.mrf.mxu0  ;;  %v1036_v0 = vpop.f32.mrf.mxu1 }
 0x113   :  { %2184 = vmatpush1.bf16.msra.mxu1 %v1116_v3  ;;  %2473 = vmatpush1.bf16.msra.mxu0 %v1132_v1  ;;  %v1081_v27 = vmax.f32 %v917_v35, 0.0  ;;  %v1113_v22 = vmax.f32 %v1045_v51, 0.0  ;;  %v909_v41 = vadd.f32 %v908_v34, %v4959_v36  ;;  %v4960_v3 = vld [vmem:[#allocation28_spill] sm:$0xff]  ;;  %v1037_v24 = vadd.f32 %v1036_v0, %v4962_v43  ;;  %v4963_v35 = vld [vmem:[#allocation34_spill] sm:$0xff] }
 0x114   :  { %v3300_v56 = vpop.f32.mrf.mxu0  ;;  %v3332_v45 = vpop.f32.mrf.mxu1  ;;  %2185 = vmatprep.subr.bf16.mxu1 %v4933_v32  ;;  %2474 = vmatprep.subr.bf16.mxu0 %v4933_v32  ;;  %v904_v51 = vadd.f32 %v4470_v4, %v4963_v35 }
 0x115   :  { %v920_v42 = vadd.f32 %v3300_v56, %v4957_v25  ;;  %v1048_v7 = vadd.f32 %v3332_v45, %v4958_v48  ;;  %v270_v56 = vpop.permute.xlu1 %269  ;;  %v4964_v25 = vld [vmem:[#allocation36_spill] sm:$0xff]  ;;  %v4965_v48 = vld [vmem:[#allocation35_spill] sm:$0xff] }
 0x116   :  { %v911_v55 = vpop.f32.mrf.mxu0  ;;  %v1039_v15 = vpop.f32.mrf.mxu1  ;;  %v901_v0 = vadd.f32 %v4450_v37, %v4965_v48  ;;  %v1078_v4 = vmax.f32 %v904_v51, 0.0  ;;  %v1024_v37 = vadd.f32 %v4487_v11, %v4378_v12  ;;  %v1016_v11 = vadd.f32 %v4428_v63, %v4444_v47 }
 0x117   :  { %v1082_v6 = vmax.f32 %v920_v42, 0.0  ;;  %v1114_v31 = vmax.f32 %v1048_v7, 0.0  ;;  %v912_v1 = vadd.f32 %v911_v55, %v4960_v3  ;;  %v1040_v50 = vadd.f32 %v1039_v15, %v4961_v28  ;;  %2186 = vmatpush1.bf16.msra.mxu1 %v1115_v9  ;;  %2475 = vmatpush1.bf16.msra.mxu0 %v1131_v2  ;;  %v4966_v2 = vld [vmem:[#allocation37_spill] sm:$0xff] }
 0x118   :  { %2187 = vmatprep.subr.bf16.mxu1 %v4933_v32  ;;  %2476 = vmatprep.subr.bf16.mxu0 %v4933_v32  ;;  %v1032_v42 = vadd.f32 %v4472_v58, %v4964_v25  ;;  %v1079_v7 = vmax.f32 %v909_v41, 0.0  ;;  %v1029_v36 = vadd.f32 %v4452_v21, %v4966_v2  ;;  %v1111_v55 = vmax.f32 %v1037_v24, 0.0 }
 0x119   :  { %v1130_v34 = vpack.c.bf16 %v1082_v6, %v1081_v27  ;;  %v1146_v18 = vpack.c.bf16 %v1114_v31, %v1113_v22  ;;  %v1080_v45 = vmax.f32 %v912_v1, 0.0  ;;  %v1112_v9 = vmax.f32 %v1040_v50, 0.0  ;;  %v4967_v27 = vld [vmem:[#allocation38_spill] sm:$0xff]  ;;  %v430_v6 = vpop.permute.xlu1 %429  ;;  %v425_v31 = vpop.permute.xlu0 %424 }
 0x11a   :  { %v896_v22 = vadd.f32 %v4485_v61, %v4967_v27  ;;  %v1110_v58 = vmax.f32 %v1032_v42, 0.0  ;;  %v1077_v3 = vmax.f32 %v901_v0, 0.0  ;;  %v893_v21 = vadd.f32 %v4462_v13, %v4358_v8 }
 0x11b   :  { %2188 = vmatpush2.bf16.msra.mxu1 %v1130_v34  ;;  %2477 = vmatpush2.bf16.msra.mxu0 %v1146_v18  ;;  %v1129_v15 = vpack.c.bf16 %v1080_v45, %v1079_v7  ;;  %v1145_v41 = vpack.c.bf16 %v1112_v9, %v1111_v55  ;;  %v1109_v1 = vmax.f32 %v1029_v36, 0.0  ;;  %v1021_v28 = vadd.f32 %v4464_v16, %v4380_v62 }
 0x11c   :  { %2189 = vmatprep.subr.bf16.mxu1 %v4933_v32  ;;  %2478 = vmatprep.subr.bf16.mxu0 %v4933_v32  ;;  %v888_v61 = vadd.f32 %v4426_v46, %v4410_v39  ;;  %v1128_v50 = vpack.c.bf16 %v1078_v4, %v1077_v3  ;;  %v1076_v12 = vmax.f32 %v896_v22, 0.0  ;;  %v1108_v8 = vmax.f32 %v1024_v37, 0.0  ;;  %v3384_v22 = vld [vmem:[#allocation2] ss:$16 sps:$4 sm:$0xff]   ;;  %v3392_v37 = vld [vmem:[#allocation2 + $0x2c] ss:$16 sps:$4 sm:$0xff]  }
 0x11d   :  { %v1144_v43 = vpack.c.bf16 %v1110_v58, %v1109_v1  ;;  %v885_v13 = vadd.f32 %v4404_v57, %v4412_v53  ;;  %v1075_v24 = vmax.f32 %v893_v21, 0.0  ;;  %v1013_v62 = vadd.f32 %v4406_v54, %v4446_v52  ;;  %v260_v39 = vpop.permute.xlu1 %259  ;;  %v255_v46 = vpop.permute.xlu0 %254  ;;  %v3390_v58 = vld [vmem:[#allocation2 + $0x24] ss:$16 sps:$4 sm:$0xff]   ;;  %v3398_v3 = vld [vmem:[#allocation2 + $0x4c] ss:$16 sps:$4 sm:$0xff]  }
 0x11e   :  { %v1107_v16 = vmax.f32 %v1021_v28, 0.0  ;;  %v1074_v35 = vmax.f32 %v888_v61, 0.0  ;;  %v880_v63 = vadd.f32 %v4438_v14, %v4477_v17  ;;  %v1106_v51 = vmax.f32 %v1016_v11, 0.0  ;;  %v3401_v21 = vld [vmem:[#allocation2 + $0x48] ss:$16 sps:$4 sm:$0xff]  }
 0x11f   :  { %2190 = vmatpush2.bf16.msra.mxu1 %v1129_v15  ;;  %2479 = vmatpush2.bf16.msra.mxu0 %v1145_v41  ;;  %v1127_v47 = vpack.c.bf16 %v1076_v12, %v1075_v24  ;;  %v1008_v57 = vadd.f32 %v4440_v19, %v4500_v26  ;;  %v1073_v34 = vmax.f32 %v885_v13, 0.0  ;;  %v877_v54 = vadd.f32 %v4418_v44, %v4479_v23  ;;  %v3387_v15 = vld [vmem:[#allocation2 + $0x8] ss:$16 sps:$4 sm:$0xff]   ;;  %v3394_v41 = vld [vmem:[#allocation2 + $0x20] ss:$16 sps:$4 sm:$0xff]  }
 0x120   :  { %2191 = vmatprep.subr.bf16.mxu1 %v4933_v32  ;;  %2480 = vmatprep.subr.bf16.mxu0 %v4933_v32  ;;  %v1143_v53 = vpack.c.bf16 %v1108_v8, %v1107_v16  ;;  %v872_v52 = vadd.f32 %v4385_v30, %v270_v56  ;;  %v1105_v18 = vmax.f32 %v1013_v62, 0.0  ;;  %v1005_v45 = vadd.f32 %v4420_v59, %v4502_v20  ;;  %v3402_v1 = vld [vmem:[#allocation2 + $0x64] ss:$16 sps:$4 sm:$0xff]   ;;  %v3404_v28 = vld [vmem:[#allocation2 + $0x6c] ss:$16 sps:$4 sm:$0xff]  }
 0x121   :  { %v1000_v14 = vadd.f32 %v4387_v33, %v430_v6  ;;  %v1126_v17 = vpack.c.bf16 %v1074_v35, %v1073_v34  ;;  %v1072_v25 = vmax.f32 %v880_v63, 0.0  ;;  %v997_v19 = vadd.f32 %v4371_v40, %v425_v31  ;;  %v420_v56 = vpop.permute.xlu1 %419  ;;  %v415_v42 = vpop.permute.xlu0 %414  ;;  %v3395_v6 = vld [vmem:[#allocation2 + $0x28] ss:$16 sps:$4 sm:$0xff]   ;;  %v3396_v31 = vld [vmem:[#allocation2 + $0x44] ss:$16 sps:$4 sm:$0xff]  }
 0x122   :  { %v1142_v26 = vpack.c.bf16 %v1106_v51, %v1105_v18  ;;  %v1104_v44 = vmax.f32 %v1008_v57, 0.0  ;;  %v869_v30 = vadd.f32 %v4369_v29, %v4513_v38  ;;  %v1071_v23 = vmax.f32 %v877_v54, 0.0  ;;  %v3407_v11 = vld [vmem:[#allocation2 + $0x68] ss:$16 sps:$4 sm:$0xff]   ;;  %v3410_v8 = vld [vmem:[#allocation2 + $0x8c] ss:$16 sps:$4 sm:$0xff]  }
 0x123   :  { %2192 = vmatpush2.bf16.msra.mxu1 %v1128_v50  ;;  %2481 = vmatpush2.bf16.msra.mxu0 %v1144_v43  ;;  %v1070_v59 = vmax.f32 %v872_v52, 0.0  ;;  %v1103_v20 = vmax.f32 %v1005_v45, 0.0  ;;  %v1102_v33 = vmax.f32 %v1000_v14, 0.0  ;;  %v864_v9 = vadd.f32 %v4394_v60, %v260_v39  ;;  %v3406_v50 = vld [vmem:[#allocation2 + $0x60] ss:$16 sps:$4 sm:$0xff]  }
 0x124   :  { %2193 = vmatprep.subr.bf16.mxu1 %v4933_v32  ;;  %2482 = vmatprep.subr.bf16.mxu0 %v4933_v32  ;;  %v861_v48 = vadd.f32 %v4374_v49, %v255_v46  ;;  %v1125_v40 = vpack.c.bf16 %v1072_v25, %v1071_v23  ;;  %v1101_v0 = vmax.f32 %v997_v19, 0.0  ;;  %v992_v29 = vadd.f32 %v4396_v5, %v420_v56  ;;  %v3408_v43 = vld [vmem:[#allocation2 + $0x84] ss:$16 sps:$4 sm:$0xff]   ;;  %v3412_v62 = vld [vmem:[#allocation2 + $0x80] ss:$16 sps:$4 sm:$0xff]  }
 0x125   :  { %v989_v38 = vadd.f32 %v4376_v10, %v415_v42  ;;  %v1141_v7 = vpack.c.bf16 %v1104_v44, %v1103_v20  ;;  %v1069_v2 = vmax.f32 %v869_v30, 0.0  ;;  %v1068_v55 = vmax.f32 %v864_v9, 0.0  ;;  %v4571_v61 = vpop.permute.xlu1 %1400  ;;  %v4573_v12 = vpop.permute.xlu0 %1396  ;;  %v3413_v39 = vld [vmem:[#allocation2 + $0x88] ss:$16 sps:$4 sm:$0xff]   ;;  %v3414_v46 = vld [vmem:[#allocation2 + $0xa4] ss:$16 sps:$4 sm:$0xff]  }
 0x126   :  { %v1067_v4 = vmax.f32 %v861_v48, 0.0  ;;  %v1140_v49 = vpack.c.bf16 %v1102_v33, %v1101_v0  ;;  %v1100_v60 = vmax.f32 %v992_v29, 0.0  ;;  %v3416_v35 = vld [vmem:[#allocation2 + $0xac] ss:$16 sps:$4 sm:$0xff]   ;;  %v3418_v51 = vld [vmem:[#allocation2 + $0xa0] ss:$16 sps:$4 sm:$0xff]  }
 0x127   :  { %2194 = vmatpush2.bf16.msra.mxu1 %v1127_v47  ;;  %2483 = vmatpush2.bf16.msra.mxu0 %v1143_v53  ;;  %v1124_v36 = vpack.c.bf16 %v1070_v59, %v1069_v2  ;;  %v1099_v27 = vmax.f32 %v989_v38, 0.0  ;;  %v3419_v57 = vld [vmem:[#allocation2 + $0xa8] ss:$16 sps:$4 sm:$0xff]   ;;  %v3420_v53 = vld [vmem:[#allocation2 + $0xc4] ss:$16 sps:$4 sm:$0xff]  }
 0x128   :  { %2195 = vmatprep.subr.bf16.mxu1 %v4933_v32  ;;  %2484 = vmatprep.subr.bf16.mxu0 %v4933_v32  ;;  %v1123_v5 = vpack.c.bf16 %v1068_v55, %v1067_v4  ;;  %v3422_v34 = vld [vmem:[#allocation2 + $0xcc] ss:$16 sps:$4 sm:$0xff]   ;;  %v3424_v18 = vld [vmem:[#allocation2 + $0xc0] ss:$16 sps:$4 sm:$0xff]   ;;  %v3425_v14 = vld [vmem:[#allocation2 + $0xc8] ss:$16 sps:$4 sm:$0xff]  }
 0x129   :  { %v1139_v10 = vpack.c.bf16 %v1100_v60, %v1099_v27  ;;  %v4575_v13 = vpop.permute.xlu1 %1332  ;;  %v4577_v24 = vpop.permute.xlu0 %1336  ;;  %v3428_v25 = vld [vmem:[#allocation2 + $0xec] ss:$16 sps:$4 sm:$0xff]   ;;  %v3430_v44 = vld [vmem:[#allocation2 + $0xe0] ss:$16 sps:$4 sm:$0xff]   ;;  %v3431_v23 = vld [vmem:[#allocation2 + $0xe8] ss:$16 sps:$4 sm:$0xff]  }
 0x12a   :  { %v3432_v56 = vld [vmem:[#allocation2 + $0x104] ss:$16 sps:$4 sm:$0xff]   ;;  %v3434_v42 = vld [vmem:[#allocation2 + $0x10c] ss:$16 sps:$4 sm:$0xff]   ;;  %v3436_v33 = vld [vmem:[#allocation2 + $0x100] ss:$16 sps:$4 sm:$0xff]  }
 0x12b   :  { %2196 = vmatpush2.bf16.msra.mxu1 %v1126_v17  ;;  %2485 = vmatpush2.bf16.msra.mxu0 %v1142_v26  ;;  %v3426_v17 = vld [vmem:[#allocation2 + $0xe4] ss:$16 sps:$4 sm:$0xff]   ;;  %v3437_v9 = vld [vmem:[#allocation2 + $0x108] ss:$16 sps:$4 sm:$0xff]   ;;  %v3442_v38 = vld [vmem:[#allocation2 + $0x120] ss:$16 sps:$4 sm:$0xff]  }
 0x12c   :  { %2197 = vmatprep.subr.bf16.mxu1 %v4933_v32  ;;  %2486 = vmatprep.subr.bf16.mxu0 %v4933_v32  ;;  %v3438_v48 = vld [vmem:[#allocation2 + $0x124] ss:$16 sps:$4 sm:$0xff]   ;;  %v3443_v2 = vld [vmem:[#allocation2 + $0x128] ss:$16 sps:$4 sm:$0xff]   ;;  %v3446_v55 = vld [vmem:[#allocation2 + $0x14c] ss:$16 sps:$4 sm:$0xff]  }
 0x12d   :  { %v4579_v16 = vpop.permute.xlu1 %1524  ;;  %v4581_v63 = vpop.permute.xlu0 %1528  ;;  %v3448_v60 = vld [vmem:[#allocation2 + $0x140] ss:$16 sps:$4 sm:$0xff]  }
 0x12e   :  { %4968 = vst [vmem:[#allocation5_spill] sm:$0xff] %v4579_v16  ;;  %4969 = vst [vmem:[#allocation11_spill] sm:$0xff] %v4581_v63  ;;  %v3537_v16 = vld [vmem:[#allocation2 + $0x328] ss:$16 sps:$4 sm:$0xff]  }
 0x12f   :  { %2198 = vmatpush2.bf16.msra.mxu1 %v1125_v40  ;;  %2487 = vmatpush2.bf16.msra.mxu0 %v1141_v7  ;;  %v3440_v40 = vld [vmem:[#allocation2 + $0x12c] ss:$16 sps:$4 sm:$0xff]  }
 0x130   :  { %2199 = vmatprep.subr.bf16.mxu1 %v4933_v32  ;;  %2488 = vmatprep.subr.bf16.mxu0 %v4933_v32 }
 0x131   :  { %v4583_v47 = vpop.permute.xlu1 %1460  ;;  %v4585_v54 = vpop.permute.xlu0 %1464 }
 0x132   :  { %4970 = vst [vmem:[#allocation10_spill] sm:$0xff] %v4583_v47  ;;  %4971 = vst [vmem:[#allocation14_spill] sm:$0xff] %v4585_v54 }
 0x133   :  { %2200 = vmatpush2.bf16.msra.mxu1 %v1124_v36  ;;  %2489 = vmatpush2.bf16.msra.mxu0 %v1140_v49  ;;  %v3444_v36 = vld [vmem:[#allocation2 + $0x144] ss:$16 sps:$4 sm:$0xff]  }
 0x134   :  { %2201 = vmatprep.subr.bf16.mxu1 %v4933_v32  ;;  %2490 = vmatprep.subr.bf16.mxu0 %v4933_v32  ;;  %v3400_v32 = vld [vmem:[#allocation2 + $0x40] ss:$16 sps:$4 sm:$0xff]  }
 0x135   :  { %v4587_v52 = vpop.permute.xlu1 %1388  ;;  %v4589_v45 = vpop.permute.xlu0 %1392 }
 0x137   :  { %2202 = vmatpush2.bf16.msra.mxu1 %v1123_v5  ;;  %2491 = vmatpush2.bf16.msra.mxu0 %v1139_v10  ;;  %v3449_v5 = vld [vmem:[#allocation2 + $0x148] ss:$16 sps:$4 sm:$0xff]   ;;  %v3450_v10 = vld [vmem:[#allocation2 + $0x164] ss:$16 sps:$4 sm:$0xff]  }
 0x139   :  { %v4591_v19 = vpop.permute.xlu1 %1324  ;;  %v4593_v26 = vpop.permute.xlu0 %1328 }
 0x13a   :  { %2204 = vmatmul.mubr.bf16.vlgmr.msra.gmra.mxu1 %v3384_v22  ;;  %2493 = vmatmul.mubr.bf16.vlgmr.msra.gmra.mxu0 %v3387_v15  ;;  %v3452_v22 = vld [vmem:[#allocation2 + $0x16c] ss:$16 sps:$4 sm:$0xff]  }
 0x13b   :  { %2211 = vmatprep.mubr.bf16.mxu1 %v3390_v58  ;;  %2500 = vmatprep.mubr.bf16.mxu0 %v3392_v37  ;;  %v3454_v37 = vld [vmem:[#allocation2 + $0x160] ss:$16 sps:$4 sm:$0xff]  }
 0x13d   :  { %v4595_v30 = vpop.permute.xlu1 %1516  ;;  %v4597_v59 = vpop.permute.xlu0 %1520 }
 0x13e   :  { %4972 = vst [vmem:[#allocation7_spill] sm:$0xff] %v4595_v30  ;;  %4973 = vst [vmem:[#allocation6_spill] sm:$0xff] %v4597_v59  ;;  %v3542_v59 = vld [vmem:[#allocation2 + $0x344] ss:$16 sps:$4 sm:$0xff]  }
 0x141   :  { %v4599_v20 = vpop.permute.xlu1 %1452  ;;  %v4601_v0 = vpop.permute.xlu0 %1456 }
 0x142   :  { %2212 = vmatmul.mubr.bf16.gmra.mxu1 %v3394_v41  ;;  %2501 = vmatmul.mubr.bf16.gmra.mxu0 %v3395_v6  ;;  %4974 = vst [vmem:[#allocation13_spill] sm:$0xff] %v4599_v20  ;;  %4975 = vst [vmem:[#allocation12_spill] sm:$0xff] %v4601_v0  ;;  %v3455_v41 = vld [vmem:[#allocation2 + $0x168] ss:$16 sps:$4 sm:$0xff]   ;;  %v3456_v6 = vld [vmem:[#allocation2 + $0x184] ss:$16 sps:$4 sm:$0xff]  }
 0x143   :  { %2219 = vmatprep.mubr.bf16.mxu1 %v3396_v31  ;;  %2508 = vmatprep.mubr.bf16.mxu0 %v3398_v3  ;;  %v3458_v31 = vld [vmem:[#allocation2 + $0x18c] ss:$16 sps:$4 sm:$0xff]  }
 0x145   :  { %v4603_v29 = vpop.permute.xlu1 %1380  ;;  %v4605_v7 = vpop.permute.xlu0 %1384 }
 0x149   :  { %v4607_v4 = vpop.permute.xlu1 %1316  ;;  %v4609_v49 = vpop.permute.xlu0 %1320 }
 0x14a   :  { %2220 = vmatmul.mubr.bf16.gmra.mxu1 %v3400_v32  ;;  %2509 = vmatmul.mubr.bf16.gmra.mxu0 %v3401_v21  ;;  %v3460_v21 = vld [vmem:[#allocation2 + $0x180] ss:$16 sps:$4 sm:$0xff]  }
 0x14b   :  { %2227 = vmatprep.mubr.bf16.mxu1 %v3402_v1  ;;  %2516 = vmatprep.mubr.bf16.mxu0 %v3404_v28  ;;  %v3461_v28 = vld [vmem:[#allocation2 + $0x188] ss:$16 sps:$4 sm:$0xff]  }
 0x14d   :  { %v4611_v27 = vpop.permute.xlu1 %1508  ;;  %v4613_v15 = vpop.permute.xlu0 %1512 }
 0x14e   :  { %4976 = vst [vmem:[#allocation24_spill] sm:$0xff] %v4611_v27  ;;  %4977 = vst [vmem:[#allocation15_spill] sm:$0xff] %v4613_v15 }
 0x151   :  { %v4615_v58 = vpop.permute.xlu1 %1444  ;;  %v4617_v3 = vpop.permute.xlu0 %1448 }
 0x152   :  { %2228 = vmatmul.mubr.bf16.gmra.mxu1 %v3406_v50  ;;  %2517 = vmatmul.mubr.bf16.gmra.mxu0 %v3407_v11  ;;  %4978 = vst [vmem:[#allocation25_spill] sm:$0xff] %v4615_v58  ;;  %4979 = vst [vmem:[#allocation16_spill] sm:$0xff] %v4617_v3  ;;  %v3462_v50 = vld [vmem:[#allocation2 + $0x1a4] ss:$16 sps:$4 sm:$0xff]   ;;  %v3464_v11 = vld [vmem:[#allocation2 + $0x1ac] ss:$16 sps:$4 sm:$0xff]  }
 0x153   :  { %2235 = vmatprep.mubr.bf16.mxu1 %v3408_v43  ;;  %2524 = vmatprep.mubr.bf16.mxu0 %v3410_v8 }
 0x155   :  { %v4619_v32 = vpop.permute.xlu1 %1372  ;;  %v4621_v1 = vpop.permute.xlu0 %1376 }
 0x159   :  { %v4623_v43 = vpop.permute.xlu1 %1308  ;;  %v4625_v8 = vpop.permute.xlu0 %1312 }
 0x15a   :  { %2236 = vmatmul.mubr.bf16.gmra.mxu1 %v3412_v62  ;;  %2525 = vmatmul.mubr.bf16.gmra.mxu0 %v3413_v39  ;;  %v3466_v62 = vld [vmem:[#allocation2 + $0x1a0] ss:$16 sps:$4 sm:$0xff]  }
 0x15b   :  { %2243 = vmatprep.mubr.bf16.mxu1 %v3414_v46  ;;  %2532 = vmatprep.mubr.bf16.mxu0 %v3416_v35  ;;  %v3467_v46 = vld [vmem:[#allocation2 + $0x1a8] ss:$16 sps:$4 sm:$0xff]   ;;  %v3468_v35 = vld [vmem:[#allocation2 + $0x1c4] ss:$16 sps:$4 sm:$0xff]  }
 0x15d   :  { %v4627_v39 = vpop.permute.xlu1 %1500 }
 0x15e   :  { %4980 = vst [vmem:[#allocation30_spill] sm:$0xff] %v4627_v39 }
 0x162   :  { %2244 = vmatmul.mubr.bf16.gmra.mxu1 %v3418_v51  ;;  %2533 = vmatmul.mubr.bf16.gmra.mxu0 %v3419_v57  ;;  %v3470_v51 = vld [vmem:[#allocation2 + $0x1cc] ss:$16 sps:$4 sm:$0xff]   ;;  %v4629_v57 = vpop.permute.xlu0 %1504 }
 0x163   :  { %2251 = vmatprep.mubr.bf16.mxu1 %v3420_v53  ;;  %2540 = vmatprep.mubr.bf16.mxu0 %v3422_v34  ;;  %4981 = vst [vmem:[#allocation9_spill] sm:$0xff] %v4629_v57  ;;  %v4631_v53 = vpop.permute.xlu1 %1436  ;;  %v3472_v34 = vld [vmem:[#allocation2 + $0x1c0] ss:$16 sps:$4 sm:$0xff]  }
 0x16a   :  { %2252 = vmatmul.mubr.bf16.gmra.mxu1 %v3424_v18  ;;  %2541 = vmatmul.mubr.bf16.gmra.mxu0 %v3425_v14  ;;  %v3473_v18 = vld [vmem:[#allocation2 + $0x1c8] ss:$16 sps:$4 sm:$0xff]   ;;  %v3474_v14 = vld [vmem:[#allocation2 + $0x1e4] ss:$16 sps:$4 sm:$0xff]  }
 0x16b   :  { %2259 = vmatprep.mubr.bf16.mxu1 %v3426_v17  ;;  %2548 = vmatprep.mubr.bf16.mxu0 %v3428_v25  ;;  %v3476_v17 = vld [vmem:[#allocation2 + $0x1ec] ss:$16 sps:$4 sm:$0xff]   ;;  %v4633_v25 = vpop.permute.xlu0 %1440 }
 0x16c   :  { %4982 = vst [vmem:[#allocation18_spill] sm:$0xff] %v4633_v25 }
 0x172   :  { %2260 = vmatmul.mubr.bf16.gmra.mxu1 %v3430_v44  ;;  %2549 = vmatmul.mubr.bf16.gmra.mxu0 %v3431_v23  ;;  %v4635_v44 = vpop.permute.xlu1 %1364  ;;  %v3478_v23 = vld [vmem:[#allocation2 + $0x1e0] ss:$16 sps:$4 sm:$0xff]  }
 0x173   :  { %2267 = vmatprep.mubr.bf16.mxu1 %v3432_v56  ;;  %2556 = vmatprep.mubr.bf16.mxu0 %v3434_v42  ;;  %v4637_v56 = vpop.permute.xlu0 %1368  ;;  %v3479_v42 = vld [vmem:[#allocation2 + $0x1e8] ss:$16 sps:$4 sm:$0xff]  }
 0x17a   :  { %2268 = vmatmul.mubr.bf16.gmra.mxu1 %v3436_v33  ;;  %2557 = vmatmul.mubr.bf16.gmra.mxu0 %v3437_v9  ;;  %v3480_v33 = vld [vmem:[#allocation2 + $0x204] ss:$16 sps:$4 sm:$0xff]   ;;  %v3482_v9 = vld [vmem:[#allocation2 + $0x20c] ss:$16 sps:$4 sm:$0xff]  }
 0x17b   :  { %2275 = vmatprep.mubr.bf16.mxu1 %v3438_v48  ;;  %2564 = vmatprep.mubr.bf16.mxu0 %v3440_v40  ;;  %v4639_v48 = vpop.permute.xlu1 %1300  ;;  %v4641_v40 = vpop.permute.xlu0 %1304 }
 0x182   :  { %2276 = vmatmul.mubr.bf16.gmra.mxu1 %v3442_v38  ;;  %2565 = vmatmul.mubr.bf16.gmra.mxu0 %v3443_v2  ;;  %v3484_v38 = vld [vmem:[#allocation2 + $0x200] ss:$16 sps:$4 sm:$0xff]   ;;  %v4643_v2 = vpop.permute.xlu1 %1492 }
 0x183   :  { %2283 = vmatprep.mubr.bf16.mxu1 %v3444_v36  ;;  %2572 = vmatprep.mubr.bf16.mxu0 %v3446_v55  ;;  %4983 = vst [vmem:[#allocation31_spill] sm:$0xff] %v4643_v2  ;;  %v3485_v36 = vld [vmem:[#allocation2 + $0x208] ss:$16 sps:$4 sm:$0xff]   ;;  %v3486_v55 = vld [vmem:[#allocation2 + $0x224] ss:$16 sps:$4 sm:$0xff]  }
 0x184   :  { %v3539_v2 = vld [vmem:[#allocation2 + $0x32c] ss:$16 sps:$4 sm:$0xff]  }
 0x18a   :  { %2284 = vmatmul.mubr.bf16.gmra.mxu1 %v3448_v60  ;;  %2573 = vmatmul.mubr.bf16.gmra.mxu0 %v3449_v5  ;;  %v3488_v60 = vld [vmem:[#allocation2 + $0x22c] ss:$16 sps:$4 sm:$0xff]   ;;  %v4645_v5 = vpop.permute.xlu0 %1496 }
 0x18b   :  { %2291 = vmatprep.mubr.bf16.mxu1 %v3450_v10  ;;  %2580 = vmatprep.mubr.bf16.mxu0 %v3452_v22  ;;  %4984 = vst [vmem:[#allocation8_spill] sm:$0xff] %v4645_v5  ;;  %v4647_v10 = vpop.permute.xlu1 %1428  ;;  %v3490_v22 = vld [vmem:[#allocation2 + $0x220] ss:$16 sps:$4 sm:$0xff]  }
 0x192   :  { %2292 = vmatmul.mubr.bf16.gmra.mxu1 %v3454_v37  ;;  %2581 = vmatmul.mubr.bf16.gmra.mxu0 %v3455_v41  ;;  %v3491_v37 = vld [vmem:[#allocation2 + $0x228] ss:$16 sps:$4 sm:$0xff]   ;;  %v3492_v41 = vld [vmem:[#allocation2 + $0x244] ss:$16 sps:$4 sm:$0xff]  }
 0x193   :  { %2299 = vmatprep.mubr.bf16.mxu1 %v3456_v6  ;;  %2588 = vmatprep.mubr.bf16.mxu0 %v3458_v31  ;;  %v3494_v6 = vld [vmem:[#allocation2 + $0x24c] ss:$16 sps:$4 sm:$0xff]   ;;  %v4649_v31 = vpop.permute.xlu0 %1432 }
 0x19a   :  { %2300 = vmatmul.mubr.bf16.gmra.mxu1 %v3460_v21  ;;  %2589 = vmatmul.mubr.bf16.gmra.mxu0 %v3461_v28  ;;  %v4651_v21 = vpop.permute.xlu1 %1356  ;;  %v3496_v28 = vld [vmem:[#allocation2 + $0x240] ss:$16 sps:$4 sm:$0xff]  }
 0x19b   :  { %2307 = vmatprep.mubr.bf16.mxu1 %v3462_v50  ;;  %2596 = vmatprep.mubr.bf16.mxu0 %v3464_v11  ;;  %v4653_v50 = vpop.permute.xlu0 %1360  ;;  %v3497_v11 = vld [vmem:[#allocation2 + $0x248] ss:$16 sps:$4 sm:$0xff]  }
 0x1a2   :  { %2308 = vmatmul.mubr.bf16.gmra.mxu1 %v3466_v62  ;;  %2597 = vmatmul.mubr.bf16.gmra.mxu0 %v3467_v46  ;;  %v3498_v62 = vld [vmem:[#allocation2 + $0x264] ss:$16 sps:$4 sm:$0xff]   ;;  %v3500_v46 = vld [vmem:[#allocation2 + $0x26c] ss:$16 sps:$4 sm:$0xff]  }
 0x1a3   :  { %2315 = vmatprep.mubr.bf16.mxu1 %v3468_v35  ;;  %2604 = vmatprep.mubr.bf16.mxu0 %v3470_v51  ;;  %v4655_v35 = vpop.permute.xlu1 %1292  ;;  %v4657_v51 = vpop.permute.xlu0 %1296 }
 0x1aa   :  { %2316 = vmatmul.mubr.bf16.gmra.mxu1 %v3472_v34  ;;  %2605 = vmatmul.mubr.bf16.gmra.mxu0 %v3473_v18  ;;  %v3502_v34 = vld [vmem:[#allocation2 + $0x260] ss:$16 sps:$4 sm:$0xff]   ;;  %v4659_v18 = vpop.permute.xlu1 %1484 }
 0x1ab   :  { %2323 = vmatprep.mubr.bf16.mxu1 %v3474_v14  ;;  %2612 = vmatprep.mubr.bf16.mxu0 %v3476_v17  ;;  %4985 = vst [vmem:[#allocation17_spill] sm:$0xff] %v4659_v18  ;;  %v3503_v14 = vld [vmem:[#allocation2 + $0x268] ss:$16 sps:$4 sm:$0xff]   ;;  %v3506_v17 = vld [vmem:[#allocation2 + $0x284] ss:$16 sps:$4 sm:$0xff]  }
 0x1b2   :  { %2324 = vmatmul.mubr.bf16.gmra.mxu1 %v3478_v23  ;;  %2613 = vmatmul.mubr.bf16.gmra.mxu0 %v3479_v42  ;;  %v3509_v23 = vld [vmem:[#allocation2 + $0x28c] ss:$16 sps:$4 sm:$0xff]   ;;  %v4661_v42 = vpop.permute.xlu0 %1488 }
 0x1b3   :  { %2331 = vmatprep.mubr.bf16.mxu1 %v3480_v33  ;;  %2620 = vmatprep.mubr.bf16.mxu0 %v3482_v9  ;;  %4986 = vst [vmem:[#allocation26_spill] sm:$0xff] %v4661_v42  ;;  %v4663_v33 = vpop.permute.xlu1 %1420  ;;  %v3504_v9 = vld [vmem:[#allocation2 + $0x280] ss:$16 sps:$4 sm:$0xff]  }
 0x1ba   :  { %2332 = vmatmul.mubr.bf16.gmra.mxu1 %v3484_v38  ;;  %2621 = vmatmul.mubr.bf16.gmra.mxu0 %v3485_v36  ;;  %v3507_v38 = vld [vmem:[#allocation2 + $0x288] ss:$16 sps:$4 sm:$0xff]   ;;  %v3512_v36 = vld [vmem:[#allocation2 + $0x2a4] ss:$16 sps:$4 sm:$0xff]  }
 0x1bb   :  { %2339 = vmatprep.mubr.bf16.mxu1 %v3486_v55  ;;  %2628 = vmatprep.mubr.bf16.mxu0 %v3488_v60  ;;  %v3515_v55 = vld [vmem:[#allocation2 + $0x2ac] ss:$16 sps:$4 sm:$0xff]   ;;  %v4665_v60 = vpop.permute.xlu0 %1424 }
 0x1c2   :  { %2340 = vmatmul.mubr.bf16.gmra.mxu1 %v3490_v22  ;;  %2629 = vmatmul.mubr.bf16.gmra.mxu0 %v3491_v37  ;;  %v4667_v22 = vpop.permute.xlu1 %1348  ;;  %v3510_v37 = vld [vmem:[#allocation2 + $0x2a0] ss:$16 sps:$4 sm:$0xff]  }
 0x1c3   :  { %2347 = vmatprep.mubr.bf16.mxu1 %v3492_v41  ;;  %2636 = vmatprep.mubr.bf16.mxu0 %v3494_v6  ;;  %v4669_v41 = vpop.permute.xlu0 %1352  ;;  %v3513_v6 = vld [vmem:[#allocation2 + $0x2a8] ss:$16 sps:$4 sm:$0xff]  }
 0x1ca   :  { %2348 = vmatmul.mubr.bf16.gmra.mxu1 %v3496_v28  ;;  %2637 = vmatmul.mubr.bf16.gmra.mxu0 %v3497_v11  ;;  %v3518_v28 = vld [vmem:[#allocation2 + $0x2c4] ss:$16 sps:$4 sm:$0xff]   ;;  %v3521_v11 = vld [vmem:[#allocation2 + $0x2cc] ss:$16 sps:$4 sm:$0xff]  }
 0x1cb   :  { %2355 = vmatprep.mubr.bf16.mxu1 %v3498_v62  ;;  %2644 = vmatprep.mubr.bf16.mxu0 %v3500_v46  ;;  %v1285_v62 = vpop.permute.xlu1 %1284  ;;  %v4671_v46 = vpop.permute.xlu0 %1288 }
 0x1d2   :  { %2356 = vmatmul.mubr.bf16.gmra.mxu1 %v3502_v34  ;;  %2645 = vmatmul.mubr.bf16.gmra.mxu0 %v3503_v14  ;;  %v3516_v34 = vld [vmem:[#allocation2 + $0x2c0] ss:$16 sps:$4 sm:$0xff]   ;;  %v4673_v14 = vpop.permute.xlu1 %1476 }
 0x1d3   :  { %2363 = vmatprep.mubr.bf16.mxu1 %v3506_v17  ;;  %2652 = vmatprep.mubr.bf16.mxu0 %v3509_v23  ;;  %4987 = vst [vmem:[#allocation19_spill] sm:$0xff] %v4673_v14  ;;  %v3519_v17 = vld [vmem:[#allocation2 + $0x2c8] ss:$16 sps:$4 sm:$0xff]   ;;  %v3524_v23 = vld [vmem:[#allocation2 + $0x2e4] ss:$16 sps:$4 sm:$0xff]  }
 0x1d4   :  { %v3545_v14 = vld [vmem:[#allocation2 + $0x34c] ss:$16 sps:$4 sm:$0xff]  }
 0x1da   :  { %2364 = vmatmul.mubr.bf16.gmra.mxu1 %v3504_v9  ;;  %2653 = vmatmul.mubr.bf16.gmra.mxu0 %v3507_v38  ;;  %v3527_v9 = vld [vmem:[#allocation2 + $0x2ec] ss:$16 sps:$4 sm:$0xff]   ;;  %v4675_v38 = vpop.permute.xlu0 %1480 }
 0x1db   :  { %2371 = vmatprep.mubr.bf16.mxu1 %v3512_v36  ;;  %2660 = vmatprep.mubr.bf16.mxu0 %v3515_v55  ;;  %4988 = vst [vmem:[#allocation27_spill] sm:$0xff] %v4675_v38  ;;  %v4677_v36 = vpop.permute.xlu1 %1412  ;;  %v3522_v55 = vld [vmem:[#allocation2 + $0x2e0] ss:$16 sps:$4 sm:$0xff]  }
 0x1df   :  { %v4681_v18 = vpop.permute.xlu1 %1340 }
 0x1e2   :  { %2372 = vmatmul.mubr.bf16.gmra.mxu1 %v3510_v37  ;;  %2661 = vmatmul.mubr.bf16.gmra.mxu0 %v3513_v6  ;;  %v3525_v37 = vld [vmem:[#allocation2 + $0x2e8] ss:$16 sps:$4 sm:$0xff]   ;;  %v3530_v6 = vld [vmem:[#allocation2 + $0x304] ss:$16 sps:$4 sm:$0xff]  }
 0x1e3   :  { %2379 = vmatprep.mubr.bf16.mxu1 %v3518_v28  ;;  %2668 = vmatprep.mubr.bf16.mxu0 %v3521_v11  ;;  %v4679_v28 = vpop.permute.xlu0 %1416  ;;  %v3533_v11 = vld [vmem:[#allocation2 + $0x30c] ss:$16 sps:$4 sm:$0xff]  }
 0x1e7   :  { %v4683_v42 = vpop.permute.xlu0 %1344 }
 0x1ea   :  { %2380 = vmatmul.mubr.bf16.gmra.mxu1 %v3516_v34  ;;  %2669 = vmatmul.mubr.bf16.gmra.mxu0 %v3519_v17  ;;  %v3528_v34 = vld [vmem:[#allocation2 + $0x300] ss:$16 sps:$4 sm:$0xff]   ;;  %v3531_v17 = vld [vmem:[#allocation2 + $0x308] ss:$16 sps:$4 sm:$0xff]  }
 0x1eb   :  { %2387 = vmatprep.mubr.bf16.mxu1 %v3524_v23  ;;  %2676 = vmatprep.mubr.bf16.mxu0 %v3527_v9  ;;  %v3536_v23 = vld [vmem:[#allocation2 + $0x324] ss:$16 sps:$4 sm:$0xff]   ;;  %v1277_v9 = vpop.permute.xlu1 %1276 }
 0x1ef   :  { %v4740_v20 = vpop.permute.xlu1 %1468 }
 0x1f0   :  { %4990 = vst [vmem:[#allocation23_spill] sm:$0xff] %v4740_v20 }
 0x1f2   :  { %2388 = vmatmul.mubr.bf16.gmra.mxu1 %v3522_v55  ;;  %2677 = vmatmul.mubr.bf16.gmra.mxu0 %v3525_v37  ;;  %v1281_v55 = vpop.permute.xlu0 %1280 }
 0x1f3   :  { %2395 = vmatprep.mubr.bf16.mxu1 %v3530_v6  ;;  %2684 = vmatprep.mubr.bf16.mxu0 %v3533_v11  ;;  %v3534_v11 = vld [vmem:[#allocation2 + $0x320] ss:$16 sps:$4 sm:$0xff]  }
 0x1fa   :  { %v2205_v5 = vpop.f32.mrf.mxu1  ;;  %2396 = vmatmul.mubr.bf16.gmra.mxu1 %v3528_v34  ;;  %v2494_v57 = vpop.f32.mrf.mxu0  ;;  %2685 = vmatmul.mubr.bf16.gmra.mxu0 %v3531_v17 }
 0x1fb   :  { %v2206_v39 = vadd.f32 %v2205_v5, %v1277_v9  ;;  %2403 = vmatprep.mubr.bf16.mxu1 %v3536_v23  ;;  %2692 = vmatprep.mubr.bf16.mxu0 %v3539_v2 }
 0x1fc   :  { %v2207_v27 = vpop.f32.mrf.mxu1  ;;  %v2496_v37 = vpop.f32.mrf.mxu0 }
 0x1fd   :  { %v2495_v63 = vadd.f32 %v2494_v57, %v2206_v39  ;;  %v3540_v37 = vld [vmem:[#allocation2 + $0x340] ss:$16 sps:$4 sm:$0xff]  }
 0x1fe   :  { %v2208_v6 = vpop.f32.mrf.mxu1  ;;  %v2497_v30 = vpop.f32.mrf.mxu0 }
 0x1ff   :  { %v2209_v15 = vadd.f32 %v2208_v6, %v1281_v55  ;;  %v2749_v5 = vmax.f32 %v2495_v63, 0.0  ;;  %v3551_v63 = vld [vmem:[#allocation2 + $0x36c] ss:$16 sps:$4 sm:$0xff]  }
 0x200   :  { %v2210_v38 = vpop.f32.mrf.mxu1  ;;  %v2499_v47 = vpop.f32.mrf.mxu0 }
 0x201   :  { %v2498_v54 = vadd.f32 %v2497_v30, %v2209_v15  ;;  %v3543_v47 = vld [vmem:[#allocation2 + $0x348] ss:$16 sps:$4 sm:$0xff]   ;;  %v3548_v15 = vld [vmem:[#allocation2 + $0x364] ss:$16 sps:$4 sm:$0xff]  }
 0x202   :  { %v2213_v34 = vpop.f32.mrf.mxu1  ;;  %2404 = vmatmul.mubr.bf16.gmra.mxu1 %v3534_v11  ;;  %v2502_v27 = vpop.f32.mrf.mxu0  ;;  %2693 = vmatmul.mubr.bf16.gmra.mxu0 %v3537_v16 }
 0x203   :  { %v2750_v17 = vmax.f32 %v2498_v54, 0.0  ;;  %v2214_v23 = vadd.f32 %v2213_v34, %v1285_v62  ;;  %2411 = vmatprep.mubr.bf16.mxu1 %v3542_v59  ;;  %2700 = vmatprep.mubr.bf16.mxu0 %v3545_v14 }
 0x204   :  { %v2215_v39 = vpop.f32.mrf.mxu1  ;;  %v2504_v9 = vpop.f32.mrf.mxu0 }
 0x205   :  { %v4685_v57 = vpack.c.bf16 %v2750_v17, %v2749_v5  ;;  %v2503_v2 = vadd.f32 %v2502_v27, %v2214_v23  ;;  %v3546_v39 = vld [vmem:[#allocation2 + $0x360] ss:$16 sps:$4 sm:$0xff]  }
 0x206   :  { %v2216_v55 = vpop.f32.mrf.mxu1  ;;  %v2505_v30 = vpop.f32.mrf.mxu0 }
 0x207   :  { %4989 = vst [vmem:[#allocation21_spill] sm:$0xff] %v4685_v57  ;;  %v2217_v38 = vadd.f32 %v2216_v55, %v4671_v46  ;;  %v2751_v16 = vmax.f32 %v2503_v2, 0.0  ;;  %v1405_v57 = vpop.permute.xlu1 %1404 }
 0x208   :  { %v2218_v6 = vpop.f32.mrf.mxu1  ;;  %v2507_v62 = vpop.f32.mrf.mxu0 }
 0x209   :  { %v2506_v54 = vadd.f32 %v2505_v30, %v2217_v38  ;;  %v3549_v38 = vld [vmem:[#allocation2 + $0x368] ss:$16 sps:$4 sm:$0xff]   ;;  %v3557_v30 = vld [vmem:[#allocation2 + $0x38c] ss:$16 sps:$4 sm:$0xff]  }
 0x20a   :  { %v2221_v11 = vpop.f32.mrf.mxu1  ;;  %2412 = vmatmul.mubr.bf16.gmra.mxu1 %v3540_v37  ;;  %v2510_v34 = vpop.f32.mrf.mxu0  ;;  %2701 = vmatmul.mubr.bf16.gmra.mxu0 %v3543_v47  ;;  %v3554_v37 = vld [vmem:[#allocation2 + $0x384] ss:$16 sps:$4 sm:$0xff]  }
 0x20b   :  { %v2752_v59 = vmax.f32 %v2506_v54, 0.0  ;;  %v2222_v14 = vadd.f32 %v2221_v11, %v4655_v35  ;;  %2419 = vmatprep.mubr.bf16.mxu1 %v3548_v15  ;;  %2708 = vmatprep.mubr.bf16.mxu0 %v3551_v63 }
 0x20c   :  { %v2223_v5 = vpop.f32.mrf.mxu1  ;;  %v2512_v23 = vpop.f32.mrf.mxu0 }
 0x20d   :  { %v4689_v17 = vpack.c.bf16 %v2752_v59, %v2751_v16  ;;  %v2511_v46 = vadd.f32 %v2510_v34, %v2222_v14  ;;  %v3552_v34 = vld [vmem:[#allocation2 + $0x380] ss:$16 sps:$4 sm:$0xff]  }
 0x20e   :  { %v2224_v27 = vpop.f32.mrf.mxu1  ;;  %v2513_v55 = vpop.f32.mrf.mxu0 }
 0x20f   :  { %v2225_v9 = vadd.f32 %v2224_v27, %v4657_v51  ;;  %v2753_v47 = vmax.f32 %v2511_v46, 0.0  ;;  %v3555_v27 = vld [vmem:[#allocation2 + $0x388] ss:$16 sps:$4 sm:$0xff]  }
 0x210   :  { %v2226_v2 = vpop.f32.mrf.mxu1  ;;  %v2515_v35 = vpop.f32.mrf.mxu0 }
 0x211   :  { %v2514_v6 = vadd.f32 %v2513_v55, %v2225_v9  ;;  %v3563_v9 = vld [vmem:[#allocation2 + $0x3ac] ss:$16 sps:$4 sm:$0xff]  }
 0x212   :  { %v2229_v54 = vpop.f32.mrf.mxu1  ;;  %2420 = vmatmul.mubr.bf16.gmra.mxu1 %v3546_v39  ;;  %v2518_v62 = vpop.f32.mrf.mxu0  ;;  %2709 = vmatmul.mubr.bf16.gmra.mxu0 %v3549_v38  ;;  %v3560_v39 = vld [vmem:[#allocation2 + $0x3a4] ss:$16 sps:$4 sm:$0xff]  }
 0x213   :  { %v2754_v15 = vmax.f32 %v2514_v6, 0.0  ;;  %v2230_v63 = vadd.f32 %v2229_v54, %v4639_v48  ;;  %2427 = vmatprep.mubr.bf16.mxu1 %v3554_v37  ;;  %2716 = vmatprep.mubr.bf16.mxu0 %v3557_v30 }
 0x214   :  { %v2231_v11 = vpop.f32.mrf.mxu1  ;;  %v2520_v59 = vpop.f32.mrf.mxu0 }
 0x215   :  { %v4693_v16 = vpack.c.bf16 %v2754_v15, %v2753_v47  ;;  %v2519_v51 = vadd.f32 %v2518_v62, %v2230_v63  ;;  %v3558_v63 = vld [vmem:[#allocation2 + $0x3a0] ss:$16 sps:$4 sm:$0xff]   ;;  %v3561_v59 = vld [vmem:[#allocation2 + $0x3a8] ss:$16 sps:$4 sm:$0xff]  }
 0x216   :  { %v2232_v14 = vpop.f32.mrf.mxu1  ;;  %v2521_v23 = vpop.f32.mrf.mxu0 }
 0x217   :  { %v2233_v5 = vadd.f32 %v2232_v14, %v4641_v40  ;;  %v2755_v38 = vmax.f32 %v2519_v51, 0.0  ;;  %v3566_v14 = vld [vmem:[#allocation2 + $0x3c4] ss:$16 sps:$4 sm:$0xff]  }
 0x218   :  { %v2234_v46 = vpop.f32.mrf.mxu1  ;;  %v2523_v48 = vpop.f32.mrf.mxu0 }
 0x219   :  { %v2522_v55 = vadd.f32 %v2521_v23, %v2233_v5 }
 0x21a   :  { %v2237_v2 = vpop.f32.mrf.mxu1  ;;  %2428 = vmatmul.mubr.bf16.gmra.mxu1 %v3552_v34  ;;  %v2526_v6 = vpop.f32.mrf.mxu0  ;;  %2717 = vmatmul.mubr.bf16.gmra.mxu0 %v3555_v27  ;;  %v3569_v34 = vld [vmem:[#allocation2 + $0x3cc] ss:$16 sps:$4 sm:$0xff]  }
 0x21b   :  { %v2756_v37 = vmax.f32 %v2522_v55, 0.0  ;;  %v2238_v30 = vadd.f32 %v2237_v2, %v4623_v43  ;;  %2435 = vmatprep.mubr.bf16.mxu1 %v3560_v39  ;;  %2724 = vmatprep.mubr.bf16.mxu0 %v3563_v9 }
 0x21c   :  { %v2239_v35 = vpop.f32.mrf.mxu1  ;;  %v2528_v47 = vpop.f32.mrf.mxu0 }
 0x21d   :  { %v4697_v54 = vpack.c.bf16 %v2756_v37, %v2755_v38  ;;  %v2527_v40 = vadd.f32 %v2526_v6, %v2238_v30  ;;  %v3564_v37 = vld [vmem:[#allocation2 + $0x3c0] ss:$16 sps:$4 sm:$0xff]   ;;  %v3567_v35 = vld [vmem:[#allocation2 + $0x3c8] ss:$16 sps:$4 sm:$0xff]   ;;  %v3572_v47 = vld [vmem:[#allocation2 + $0x3e4] ss:$16 sps:$4 sm:$0xff]  }
 0x21e   :  { %v2240_v15 = vpop.f32.mrf.mxu1  ;;  %v2529_v11 = vpop.f32.mrf.mxu0 }
 0x21f   :  { %v2241_v62 = vadd.f32 %v2240_v15, %v4625_v8  ;;  %v2757_v27 = vmax.f32 %v2527_v40, 0.0  ;;  %v3575_v15 = vld [vmem:[#allocation2 + $0x3ec] ss:$16 sps:$4 sm:$0xff]  }
 0x220   :  { %v2242_v51 = vpop.f32.mrf.mxu1  ;;  %v2531_v43 = vpop.f32.mrf.mxu0 }
 0x221   :  { %v2530_v5 = vadd.f32 %v2529_v11, %v2241_v62 }
 0x222   :  { %v2245_v23 = vpop.f32.mrf.mxu1  ;;  %2436 = vmatmul.mubr.bf16.gmra.mxu1 %v3558_v63  ;;  %v2534_v9 = vpop.f32.mrf.mxu0  ;;  %2725 = vmatmul.mubr.bf16.gmra.mxu0 %v3561_v59 }
 0x223   :  { %v2758_v39 = vmax.f32 %v2530_v5, 0.0  ;;  %v2246_v46 = vadd.f32 %v2245_v23, %v4607_v4  ;;  %2443 = vmatprep.mubr.bf16.mxu1 %v3566_v14  ;;  %2732 = vmatprep.mubr.bf16.mxu0 %v3569_v34 }
 0x224   :  { %v2247_v55 = vpop.f32.mrf.mxu1  ;;  %v2536_v2 = vpop.f32.mrf.mxu0 }
 0x225   :  { %v4701_v48 = vpack.c.bf16 %v2758_v39, %v2757_v27  ;;  %v2535_v8 = vadd.f32 %v2534_v9, %v2246_v46  ;;  %v3570_v27 = vld [vmem:[#allocation2 + $0x3e0] ss:$16 sps:$4 sm:$0xff]   ;;  %v3573_v9 = vld [vmem:[#allocation2 + $0x3e8] ss:$16 sps:$4 sm:$0xff]  }
 0x226   :  { %v2248_v38 = vpop.f32.mrf.mxu1  ;;  %v2537_v6 = vpop.f32.mrf.mxu0 }
 0x227   :  { %v2249_v30 = vadd.f32 %v2248_v38, %v4609_v49  ;;  %v2759_v11 = vmax.f32 %v2535_v8, 0.0 }
 0x228   :  { %v2250_v40 = vpop.f32.mrf.mxu1  ;;  %v2539_v4 = vpop.f32.mrf.mxu0 }
 0x229   :  { %v2538_v63 = vadd.f32 %v2537_v6, %v2249_v30 }
 0x22a   :  { %v2253_v62 = vpop.f32.mrf.mxu1  ;;  %2444 = vmatmul.mubr.bf16.gmra.mxu1 %v3564_v37  ;;  %v2542_v51 = vpop.f32.mrf.mxu0  ;;  %2733 = vmatmul.mubr.bf16.gmra.mxu0 %v3567_v35 }
 0x22b   :  { %v2760_v59 = vmax.f32 %v2538_v63, 0.0  ;;  %v2254_v14 = vadd.f32 %v2253_v62, %v4591_v19  ;;  %2451 = vmatprep.mubr.bf16.mxu1 %v3572_v47  ;;  %2740 = vmatprep.mubr.bf16.mxu0 %v3575_v15 }
 0x22c   :  { %v2255_v34 = vpop.f32.mrf.mxu1  ;;  %v2544_v43 = vpop.f32.mrf.mxu0 }
 0x22d   :  { %v4705_v5 = vpack.c.bf16 %v2760_v59, %v2759_v11  ;;  %v2543_v49 = vadd.f32 %v2542_v51, %v2254_v14 }
 0x22e   :  { %v2256_v23 = vpop.f32.mrf.mxu1  ;;  %v2545_v46 = vpop.f32.mrf.mxu0 }
 0x22f   :  { %v2257_v39 = vadd.f32 %v2256_v23, %v4593_v26  ;;  %v2761_v19 = vmax.f32 %v2543_v49, 0.0 }
 0x230   :  { %v2258_v55 = vpop.f32.mrf.mxu1  ;;  %v2547_v2 = vpop.f32.mrf.mxu0 }
 0x231   :  { %v2546_v8 = vadd.f32 %v2545_v46, %v2257_v39 }
 0x232   :  { %v2261_v38 = vpop.f32.mrf.mxu1  ;;  %2452 = vmatmul.mubr.bf16.gmra.mxu1 %v3570_v27  ;;  %v2550_v6 = vpop.f32.mrf.mxu0  ;;  %2741 = vmatmul.mubr.bf16.gmra.mxu0 %v3573_v9 }
 0x233   :  { %v2762_v37 = vmax.f32 %v2546_v8, 0.0  ;;  %v2262_v30 = vadd.f32 %v2261_v38, %v4575_v13 }
 0x234   :  { %v2263_v35 = vpop.f32.mrf.mxu1  ;;  %v2552_v15 = vpop.f32.mrf.mxu0 }
 0x235   :  { %v4709_v47 = vpack.c.bf16 %v2762_v37, %v2761_v19  ;;  %v2551_v40 = vadd.f32 %v2550_v6, %v2262_v30 }
 0x236   :  { %v2264_v63 = vpop.f32.mrf.mxu1  ;;  %v2553_v4 = vpop.f32.mrf.mxu0 }
 0x237   :  { %v2265_v26 = vadd.f32 %v2264_v63, %v4577_v24  ;;  %v2763_v51 = vmax.f32 %v2551_v40, 0.0 }
 0x238   :  { %v2266_v62 = vpop.f32.mrf.mxu1  ;;  %v2555_v59 = vpop.f32.mrf.mxu0 }
 0x239   :  { %v2554_v11 = vadd.f32 %v2553_v4, %v2265_v26 }
 0x23a   :  { %v2269_v14 = vpop.f32.mrf.mxu1  ;;  %v2558_v13 = vpop.f32.mrf.mxu0 }
 0x23b   :  { %v2764_v34 = vmax.f32 %v2554_v11, 0.0  ;;  %v2270_v49 = vadd.f32 %v2269_v14, %v4681_v18 }
 0x23c   :  { %v2271_v43 = vpop.f32.mrf.mxu1  ;;  %v2560_v39 = vpop.f32.mrf.mxu0 }
 0x23d   :  { %v4713_v23 = vpack.c.bf16 %v2764_v34, %v2763_v51  ;;  %v2559_v27 = vadd.f32 %v2558_v13, %v2270_v49 }
 0x23e   :  { %v2272_v46 = vpop.f32.mrf.mxu1  ;;  %v2561_v55 = vpop.f32.mrf.mxu0 }
 0x23f   :  { %v2273_v9 = vadd.f32 %v2272_v46, %v4683_v42  ;;  %v2765_v19 = vmax.f32 %v2559_v27, 0.0 }
 0x240   :  { %v2274_v24 = vpop.f32.mrf.mxu1  ;;  %v2563_v2 = vpop.f32.mrf.mxu0 }
 0x241   :  { %v2562_v8 = vadd.f32 %v2561_v55, %v2273_v9 }
 0x242   :  { %v2277_v38 = vpop.f32.mrf.mxu1  ;;  %v2566_v6 = vpop.f32.mrf.mxu0 }
 0x243   :  { %v2766_v37 = vmax.f32 %v2562_v8, 0.0  ;;  %v2278_v30 = vadd.f32 %v2277_v38, %v4667_v22 }
 0x244   :  { %v2279_v18 = vpop.f32.mrf.mxu1  ;;  %v2568_v15 = vpop.f32.mrf.mxu0 }
 0x245   :  { %v4717_v35 = vpack.c.bf16 %v2766_v37, %v2765_v19  ;;  %v2567_v40 = vadd.f32 %v2566_v6, %v2278_v30 }
 0x246   :  { %v2280_v63 = vpop.f32.mrf.mxu1  ;;  %v2569_v4 = vpop.f32.mrf.mxu0 }
 0x247   :  { %v2281_v26 = vadd.f32 %v2280_v63, %v4669_v41  ;;  %v2767_v14 = vmax.f32 %v2567_v40, 0.0 }
 0x248   :  { %v2282_v42 = vpop.f32.mrf.mxu1  ;;  %v2571_v11 = vpop.f32.mrf.mxu0 }
 0x249   :  { %v2570_v62 = vadd.f32 %v2569_v4, %v2281_v26 }
 0x24a   :  { %v4720_v59 = vpop.f32.mrf.mxu1  ;;  %v4722_v34 = vpop.f32.mrf.mxu0 }
 0x24b   :  { %v2768_v51 = vmax.f32 %v2570_v62, 0.0 }
 0x24c   :  { %v2287_v22 = vpop.f32.mrf.mxu1  ;;  %v2576_v13 = vpop.f32.mrf.mxu0 }
 0x24d   :  { %v4724_v49 = vpack.c.bf16 %v2768_v51, %v2767_v14 }
 0x24e   :  { %v4726_v43 = vpop.f32.mrf.mxu1  ;;  %v4728_v27 = vpop.f32.mrf.mxu0 }
 0x250   :  { %v2290_v39 = vpop.f32.mrf.mxu1  ;;  %v2579_v41 = vpop.f32.mrf.mxu0 }
 0x252   :  { %v4730_v46 = vpop.f32.mrf.mxu1  ;;  %v4732_v9 = vpop.f32.mrf.mxu0 }
 0x254   :  { %v2295_v55 = vpop.f32.mrf.mxu1  ;;  %v2584_v24 = vpop.f32.mrf.mxu0 }
 0x256   :  { %v4734_v8 = vpop.f32.mrf.mxu1  ;;  %v4736_v2 = vpop.f32.mrf.mxu0 }
 0x258   :  { %v2298_v38 = vpop.f32.mrf.mxu1  ;;  %v2587_v19 = vpop.f32.mrf.mxu0 }
 0x25a   :  { %v2301_v37 = vpop.f32.mrf.mxu1  ;;  %v4738_v30 = vpop.f32.mrf.mxu0 }
 0x25c   :  { %v2303_v6 = vpop.f32.mrf.mxu1  ;;  %v2592_v18 = vpop.f32.mrf.mxu0 }
 0x25e   :  { %v2304_v40 = vpop.f32.mrf.mxu1  ;;  %v2593_v15 = vpop.f32.mrf.mxu0 }
 0x260   :  { %v2306_v63 = vpop.f32.mrf.mxu1  ;;  %v2595_v26 = vpop.f32.mrf.mxu0 }
 0x262   :  { %v2309_v4 = vpop.f32.mrf.mxu1  ;;  %v2598_v42 = vpop.f32.mrf.mxu0 }
 0x264   :  { %v2311_v62 = vpop.f32.mrf.mxu1  ;;  %v2600_v11 = vpop.f32.mrf.mxu0 }
 0x266   :  { %v2312_v14 = vpop.f32.mrf.mxu1  ;;  %v2601_v51 = vpop.f32.mrf.mxu0 }
 0x267   :  { %v2313_v3 = vadd.f32 %v2312_v14, %v4605_v7 }
 0x268   :  { %v2314_v22 = vpop.f32.mrf.mxu1  ;;  %v2603_v13 = vpop.f32.mrf.mxu0 }
 0x26a   :  { %v2317_v39 = vpop.f32.mrf.mxu1  ;;  %v2606_v41 = vpop.f32.mrf.mxu0 }
 0x26b   :  { %v2318_v22 = vadd.f32 %v2317_v39, %v4587_v52  ;;  %v2305_v52 = vadd.f32 %v2304_v40, %v4621_v1  ;;  %v2602_v39 = vadd.f32 %v2601_v51, %v2313_v3 }
 0x26c   :  { %v2319_v55 = vpop.f32.mrf.mxu1  ;;  %v2608_v24 = vpop.f32.mrf.mxu0 }
 0x26d   :  { %v4746_v24 = vpop.permute.xlu0 %1472  ;;  %v2594_v1 = vadd.f32 %v2593_v15, %v2305_v52  ;;  %v2776_v40 = vmax.f32 %v2602_v39, 0.0 }
 0x26e   :  { %v2320_v38 = vpop.f32.mrf.mxu1  ;;  %v2609_v19 = vpop.f32.mrf.mxu0  ;;  %4991 = vst [vmem:[#allocation20_spill] sm:$0xff] %v4746_v24 }
 0x26f   :  { %v2321_v63 = vadd.f32 %v2320_v38, %v4589_v45  ;;  %v2310_v45 = vadd.f32 %v2309_v4, %v4603_v29  ;;  %v2774_v15 = vmax.f32 %v2594_v1, 0.0 }
 0x270   :  { %v2322_v6 = vpop.f32.mrf.mxu1  ;;  %v2611_v18 = vpop.f32.mrf.mxu0 }
 0x271   :  { %v2610_v58 = vadd.f32 %v2609_v19, %v2321_v63  ;;  %v2302_v63 = vadd.f32 %v2301_v37, %v4619_v32  ;;  %v2294_v32 = vadd.f32 %v4730_v46, %v4635_v44  ;;  %v2286_v44 = vadd.f32 %v4720_v59, %v4651_v21 }
 0x272   :  { %v2325_v0 = vpop.f32.mrf.mxu1  ;;  %v2614_v62 = vpop.f32.mrf.mxu0 }
 0x273   :  { %v2326_v26 = vadd.f32 %v2325_v0, %v4573_v12  ;;  %v2607_v12 = vadd.f32 %v2606_v41, %v2318_v22  ;;  %v2778_v7 = vmax.f32 %v2610_v58, 0.0  ;;  %v2591_v37 = vadd.f32 %v4738_v30, %v2302_v63 }
 0x274   :  { %v2327_v11 = vpop.f32.mrf.mxu1  ;;  %v2616_v13 = vpop.f32.mrf.mxu0  ;;  %v2583_v30 = vadd.f32 %v4732_v9, %v2294_v32 }
 0x275   :  { %v2615_v6 = vadd.f32 %v2614_v62, %v2326_v26  ;;  %v1409_v26 = vpop.permute.xlu0 %1408  ;;  %v2777_v62 = vmax.f32 %v2607_v12, 0.0 }
 0x276   :  { %v2328_v55 = vpop.f32.mrf.mxu1  ;;  %v2617_v25 = vpop.f32.mrf.mxu0  ;;  %v2771_v59 = vmax.f32 %v2583_v30, 0.0 }
 0x277   :  { %v2329_v18 = vadd.f32 %v2328_v55, %v4571_v61  ;;  %v2779_v14 = vmax.f32 %v2615_v6, 0.0  ;;  %v2827_v58 = vpack.c.bf16 %v2778_v7, %v2777_v62 }
 0x278   :  { %v2330_v20 = vpop.f32.mrf.mxu1  ;;  %v2619_v38 = vpop.f32.mrf.mxu0 }
 0x279   :  { %v2618_v0 = vadd.f32 %v2617_v25, %v2329_v18  ;;  %v2599_v20 = vadd.f32 %v2598_v42, %v2310_v45  ;;  %v2297_v25 = vadd.f32 %v4734_v8, %v4637_v56  ;;  %v2289_v56 = vadd.f32 %v4726_v43, %v4653_v50 }
 0x27a   :  { %v2333_v11 = vpop.f32.mrf.mxu1  ;;  %v2622_v19 = vpop.f32.mrf.mxu0  ;;  %v2773_v38 = vmax.f32 %v2591_v37, 0.0 }
 0x27b   :  { %v2780_v13 = vmax.f32 %v2618_v0, 0.0  ;;  %v2334_v24 = vadd.f32 %v2333_v11, %v1405_v57  ;;  %v2775_v42 = vmax.f32 %v2599_v20, 0.0  ;;  %v2586_v8 = vadd.f32 %v4736_v2, %v2297_v25 }
 0x27c   :  { %v2335_v61 = vpop.f32.mrf.mxu1  ;;  %v2624_v4 = vpop.f32.mrf.mxu0  ;;  %v2578_v52 = vadd.f32 %v4728_v27, %v2289_v56 }
 0x27d   :  { %v2828_v55 = vpack.c.bf16 %v2780_v13, %v2779_v14  ;;  %v2623_v29 = vadd.f32 %v2622_v19, %v2334_v24  ;;  %v2826_v18 = vpack.c.bf16 %v2776_v40, %v2775_v42  ;;  %v2772_v11 = vmax.f32 %v2586_v8, 0.0 }
 0x27e   :  { %v2336_v3 = vpop.f32.mrf.mxu1  ;;  %v2625_v41 = vpop.f32.mrf.mxu0  ;;  %v2770_v19 = vmax.f32 %v2578_v52, 0.0 }
 0x27f   :  { %v2337_v51 = vadd.f32 %v2336_v3, %v1409_v26  ;;  %3221 = vmatprep.subr.bf16.mxu0 %v2828_v55  ;;  %v2781_v45 = vmax.f32 %v2623_v29, 0.0  ;;  %v2824_v61 = vpack.c.bf16 %v2772_v11, %v2771_v59  ;;  %v4994_v59 = vld [vmem:[#allocation25_spill] sm:$0xff] }
 0x280   :  { %v2338_v57 = vpop.f32.mrf.mxu1  ;;  %3222 = vmatpush3.bf16.msra.mxu0 %v4713_v23  ;;  %v2627_v24 = vpop.f32.mrf.mxu0 }
 0x281   :  { %v2626_v22 = vadd.f32 %v2625_v41, %v2337_v51  ;;  %3223 = vmatprep.subr.bf16.mxu0 %v2827_v58 }
 0x282   :  { %v2341_v6 = vpop.f32.mrf.mxu1  ;;  %v2630_v0 = vpop.f32.mrf.mxu0 }
 0x283   :  { %v2782_v12 = vmax.f32 %v2626_v22, 0.0  ;;  %v2342_v23 = vadd.f32 %v2341_v6, %v4677_v36  ;;  %v2825_v36 = vpack.c.bf16 %v2774_v15, %v2773_v38 }
 0x284   :  { %v2343_v46 = vpop.f32.mrf.mxu1  ;;  %3224 = vmatpush3.bf16.msra.mxu0 %v4709_v47  ;;  %v2632_v2 = vpop.f32.mrf.mxu0  ;;  %v2575_v47 = vadd.f32 %v4722_v34, %v2286_v44 }
 0x285   :  { %v4766_v50 = vpack.c.bf16 %v2782_v12, %v2781_v45  ;;  %v2631_v43 = vadd.f32 %v2630_v0, %v2342_v23  ;;  %3225 = vmatprep.subr.bf16.mxu0 %v2826_v18  ;;  %v4992_v46 = vld [vmem:[#allocation21_spill] sm:$0xff]  ;;  %v4993_v2 = vld [vmem:[#allocation18_spill] sm:$0xff] }
 0x286   :  { %v2344_v39 = vpop.f32.mrf.mxu1  ;;  %v2633_v14 = vpop.f32.mrf.mxu0 }
 0x287   :  { %v2345_v7 = vadd.f32 %v2344_v39, %v4679_v28  ;;  %v2783_v26 = vmax.f32 %v2631_v43, 0.0  ;;  %v2769_v28 = vmax.f32 %v2575_v47, 0.0  ;;  %v2847_v39 = vld [vmem:[%s4886_s6] sm:$0xff] }
 0x288   :  { %v2346_v21 = vpop.f32.mrf.mxu1  ;;  %3226 = vmatpush3.bf16.msra.mxu0 %v4705_v5  ;;  %v2635_v13 = vpop.f32.mrf.mxu0  ;;  %2850 = vperm.xlu1 %3348, %v2847_v39  }
 0x289   :  { %v2634_v9 = vadd.f32 %v2633_v14, %v2345_v7  ;;  %3227 = vmatprep.subr.bf16.mxu0 %v2825_v36  ;;  %v2823_v25 = vpack.c.bf16 %v2770_v19, %v2769_v28 }
 0x28a   :  { %v2349_v63 = vpop.f32.mrf.mxu1  ;;  %v2638_v62 = vpop.f32.mrf.mxu0 }
 0x28b   :  { %v2784_v27 = vmax.f32 %v2634_v9, 0.0  ;;  %v2350_v20 = vadd.f32 %v2349_v63, %v4663_v33 }
 0x28c   :  { %v2351_v55 = vpop.f32.mrf.mxu1  ;;  %3228 = vmatpush3.bf16.msra.mxu0 %v4701_v48  ;;  %v2640_v34 = vpop.f32.mrf.mxu0 }
 0x28d   :  { %v4774_v29 = vpack.c.bf16 %v2784_v27, %v2783_v26  ;;  %v2639_v5 = vadd.f32 %v2638_v62, %v2350_v20  ;;  %3229 = vmatprep.subr.bf16.mxu0 %v2824_v61  ;;  %v4995_v20 = vld [vmem:[#allocation16_spill] sm:$0xff] }
 0x28e   :  { %v2352_v4 = vpop.f32.mrf.mxu1  ;;  %v2641_v3 = vpop.f32.mrf.mxu0 }
 0x28f   :  { %v2353_v1 = vadd.f32 %v2352_v4, %v4665_v60  ;;  %v2785_v41 = vmax.f32 %v2639_v5, 0.0  ;;  %v2845_v60 = vld [vmem:[%s4884_s4] sm:$0xff] }
 0x290   :  { %v2354_v40 = vpop.f32.mrf.mxu1  ;;  %3230 = vmatpush3.bf16.msra.mxu0 %v4697_v54  ;;  %v2643_v33 = vpop.f32.mrf.mxu0  ;;  %v3183_v24 = vcombine.high %v2845_v60, %v2845_v60 }
 0x291   :  { %v2642_v58 = vadd.f32 %v2641_v3, %v2353_v1  ;;  %3231 = vmatprep.subr.bf16.mxu0 %v2823_v25  ;;  %v4996_v3 = vld [vmem:[#allocation13_spill] sm:$0xff] }
 0x292   :  { %v2357_v51 = vpop.f32.mrf.mxu1  ;;  %v2646_v32 = vpop.f32.mrf.mxu0  ;;  %2899 = vmatprep.mubr.bf16.mxu0 %v3183_v24 }
 0x293   :  { %v2786_v48 = vmax.f32 %v2642_v58, 0.0  ;;  %v2358_v57 = vadd.f32 %v2357_v51, %v4647_v10 }
 0x294   :  { %v2359_v37 = vpop.f32.mrf.mxu1  ;;  %3232 = vmatpush3.bf16.msra.mxu0 %v4693_v16  ;;  %v2648_v54 = vpop.f32.mrf.mxu0 }
 0x295   :  { %v4783_v42 = vpack.c.bf16 %v2786_v48, %v2785_v41  ;;  %v2647_v22 = vadd.f32 %v2646_v32, %v2358_v57  ;;  %3233 = vmatprep.subr.bf16.mxu0 %v4724_v49  ;;  %v3182_v49 = vcombine.low %v2845_v60, %v2845_v60  ;;  %v4997_v32 = vld [vmem:[#allocation12_spill] sm:$0xff] }
 0x296   :  { %v2360_v56 = vpop.f32.mrf.mxu1  ;;  %v2649_v15 = vpop.f32.mrf.mxu0 }
 0x297   :  { %v2361_v8 = vadd.f32 %v2360_v56, %v4649_v31  ;;  %v2787_v45 = vmax.f32 %v2647_v22, 0.0  ;;  %v4794_v31 = vld [vmem:[%s4884_s4 + $0x8] sm:$0xff] }
 0x298   :  { %v2362_v10 = vpop.f32.mrf.mxu1  ;;  %3234 = vmatpush3.bf16.msra.mxu0 %v4689_v17  ;;  %v2651_v6 = vpop.f32.mrf.mxu0 }
 0x299   :  { %v2650_v16 = vadd.f32 %v2649_v15, %v2361_v8  ;;  %3235 = vmatprep.subr.bf16.mxu0 %v4717_v35  ;;  %v3185_v35 = vcombine.high %v4794_v31, %v4794_v31  ;;  %v4998_v10 = vld [vmem:[#allocation10_spill] sm:$0xff] }
 0x29a   :  { %v2365_v18 = vpop.f32.mrf.mxu1  ;;  %v2654_v0 = vpop.f32.mrf.mxu0 }
 0x29b   :  { %v2788_v12 = vmax.f32 %v2650_v16, 0.0  ;;  %v2366_v23 = vadd.f32 %v2365_v18, %v4631_v53  ;;  %2939 = vmatprep.mubr.bf16.mxu1 %v3185_v35 }
 0x29c   :  { %v2367_v44 = vpop.f32.mrf.mxu1  ;;  %3236 = vmatpush3.bf16.msra.mxu0 %v4992_v46  ;;  %v2656_v38 = vpop.f32.mrf.mxu0 }
 0x29d   :  { %v4796_v17 = vpack.c.bf16 %v2788_v12, %v2787_v45  ;;  %v2655_v30 = vadd.f32 %v2654_v0, %v2366_v23 }
 0x29e   :  { %v2368_v43 = vpop.f32.mrf.mxu1  ;;  %v2657_v52 = vpop.f32.mrf.mxu0 }
 0x29f   :  { %v2369_v53 = vadd.f32 %v2368_v43, %v4993_v2  ;;  %2900 = vmatmul.mubr.bf16.vlgmr.msra.gmra.mxu0 %v3182_v49  ;;  %v2789_v21 = vmax.f32 %v2655_v30, 0.0  ;;  %v4999_v49 = vld [vmem:[#allocation14_spill] sm:$0xff] }
 0x2a0   :  { %v2370_v11 = vpop.f32.mrf.mxu1  ;;  %v2659_v7 = vpop.f32.mrf.mxu0 }
 0x2a1   :  { %v2658_v36 = vadd.f32 %v2657_v52, %v2369_v53  ;;  %v5000_v52 = vld [vmem:[#allocation23_spill] sm:$0xff] }
 0x2a2   :  { %v2373_v14 = vpop.f32.mrf.mxu1  ;;  %v2662_v13 = vpop.f32.mrf.mxu0 }
 0x2a3   :  { %v2790_v47 = vmax.f32 %v2658_v36, 0.0  ;;  %v2374_v9 = vadd.f32 %v2373_v14, %v4994_v59  ;;  %v5001_v59 = vld [vmem:[#allocation20_spill] sm:$0xff] }
 0x2a4   :  { %v2375_v19 = vpop.f32.mrf.mxu1  ;;  %v2664_v26 = vpop.f32.mrf.mxu0 }
 0x2a5   :  { %v4805_v63 = vpack.c.bf16 %v2790_v47, %v2789_v21  ;;  %v2663_v61 = vadd.f32 %v2662_v13, %v2374_v9 }
 0x2a6   :  { %v2376_v27 = vpop.f32.mrf.mxu1  ;;  %v2665_v55 = vpop.f32.mrf.mxu0 }
 0x2a7   :  { %v2377_v62 = vadd.f32 %v2376_v27, %v4995_v20  ;;  %v2791_v25 = vmax.f32 %v2663_v61, 0.0 }
 0x2a8   :  { %v2378_v28 = vpop.f32.mrf.mxu1  ;;  %v2667_v34 = vpop.f32.mrf.mxu0 }
 0x2a9   :  { %v2666_v5 = vadd.f32 %v2665_v55, %v2377_v62  ;;  %v5002_v55 = vld [vmem:[#allocation19_spill] sm:$0xff] }
 0x2aa   :  { %v2381_v4 = vpop.f32.mrf.mxu1  ;;  %v2670_v58 = vpop.f32.mrf.mxu0 }
 0x2ab   :  { %v2792_v1 = vmax.f32 %v2666_v5, 0.0  ;;  %v2382_v40 = vadd.f32 %v2381_v4, %v4996_v3 }
 0x2ac   :  { %v2383_v33 = vpop.f32.mrf.mxu1  ;;  %v2672_v48 = vpop.f32.mrf.mxu0 }
 0x2ad   :  { %v4809_v51 = vpack.c.bf16 %v2792_v1, %v2791_v25  ;;  %v2671_v41 = vadd.f32 %v2670_v58, %v2382_v40  ;;  %v5003_v40 = vld [vmem:[#allocation27_spill] sm:$0xff] }
 0x2ae   :  { %v2384_v57 = vpop.f32.mrf.mxu1  ;;  %v2673_v60 = vpop.f32.mrf.mxu0 }
 0x2af   :  { %v2385_v37 = vadd.f32 %v2384_v57, %v4997_v32  ;;  %v2793_v8 = vmax.f32 %v2671_v41, 0.0 }
 0x2b0   :  { %v2386_v22 = vpop.f32.mrf.mxu1  ;;  %v2675_v24 = vpop.f32.mrf.mxu0 }
 0x2b1   :  { %v2674_v54 = vadd.f32 %v2673_v60, %v2385_v37 }
 0x2b2   :  { %v2389_v56 = vpop.f32.mrf.mxu1  ;;  %v2678_v6 = vpop.f32.mrf.mxu0 }
 0x2b3   :  { %v2794_v15 = vmax.f32 %v2674_v54, 0.0  ;;  %v2390_v16 = vadd.f32 %v2389_v56, %v4998_v10 }
 0x2b4   :  { %v2391_v18 = vpop.f32.mrf.mxu1  ;;  %v2680_v23 = vpop.f32.mrf.mxu0 }
 0x2b5   :  { %v4813_v45 = vpack.c.bf16 %v2794_v15, %v2793_v8  ;;  %v2679_v12 = vadd.f32 %v2678_v6, %v2390_v16 }
 0x2b6   :  { %v2392_v0 = vpop.f32.mrf.mxu1  ;;  %v2681_v46 = vpop.f32.mrf.mxu0 }
 0x2b7   :  { %v2393_v44 = vadd.f32 %v2392_v0, %v4999_v49  ;;  %v2795_v2 = vmax.f32 %v2679_v12, 0.0 }
 0x2b8   :  { %v2394_v30 = vpop.f32.mrf.mxu1  ;;  %v2683_v35 = vpop.f32.mrf.mxu0 }
 0x2b9   :  { %v2682_v38 = vadd.f32 %v2681_v46, %v2393_v44 }
 0x2ba   :  { %v2397_v43 = vpop.f32.mrf.mxu1  ;;  %v2686_v11 = vpop.f32.mrf.mxu0 }
 0x2bb   :  { %v2796_v53 = vmax.f32 %v2682_v38, 0.0  ;;  %v2398_v39 = vadd.f32 %v2397_v43, %v5000_v52 }
 0x2bc   :  { %v2399_v36 = vpop.f32.mrf.mxu1  ;;  %v2688_v21 = vpop.f32.mrf.mxu0 }
 0x2bd   :  { %v4817_v7 = vpack.c.bf16 %v2796_v53, %v2795_v2  ;;  %v2687_v14 = vadd.f32 %v2686_v11, %v2398_v39 }
 0x2be   :  { %v2400_v47 = vpop.f32.mrf.mxu1  ;;  %v2689_v13 = vpop.f32.mrf.mxu0 }
 0x2bf   :  { %v2401_v9 = vadd.f32 %v2400_v47, %v5001_v59  ;;  %v2797_v20 = vmax.f32 %v2687_v14, 0.0 }
 0x2c0   :  { %v2402_v19 = vpop.f32.mrf.mxu1  ;;  %v2691_v26 = vpop.f32.mrf.mxu0 }
 0x2c1   :  { %v2690_v61 = vadd.f32 %v2689_v13, %v2401_v9 }
 0x2c2   :  { %v2405_v27 = vpop.f32.mrf.mxu1  ;;  %v2694_v5 = vpop.f32.mrf.mxu0 }
 0x2c3   :  { %v2798_v62 = vmax.f32 %v2690_v61, 0.0  ;;  %v2406_v28 = vadd.f32 %v2405_v27, %v5002_v55 }
 0x2c4   :  { %v2407_v34 = vpop.f32.mrf.mxu1  ;;  %v2696_v1 = vpop.f32.mrf.mxu0 }
 0x2c5   :  { %v4821_v4 = vpack.c.bf16 %v2798_v62, %v2797_v20  ;;  %v2695_v25 = vadd.f32 %v2694_v5, %v2406_v28  ;;  %v5004_v34 = vld [vmem:[#allocation6_spill] sm:$0xff]  ;;  %v5005_v1 = vld [vmem:[#allocation5_spill] sm:$0xff] }
 0x2c6   :  { %v2408_v3 = vpop.f32.mrf.mxu1  ;;  %v2697_v33 = vpop.f32.mrf.mxu0 }
 0x2c7   :  { %v2409_v58 = vadd.f32 %v2408_v3, %v5003_v40  ;;  %v2799_v37 = vmax.f32 %v2695_v25, 0.0 }
 0x2c8   :  { %v2410_v41 = vpop.f32.mrf.mxu1  ;;  %v2699_v57 = vpop.f32.mrf.mxu0 }
 0x2c9   :  { %v2698_v48 = vadd.f32 %v2697_v33, %v2409_v58  ;;  %v5006_v33 = vld [vmem:[#allocation7_spill] sm:$0xff] }
 0x2ca   :  { %v4824_v32 = vpop.f32.mrf.mxu1  ;;  %v4826_v22 = vpop.f32.mrf.mxu0 }
 0x2cb   :  { %v2800_v60 = vmax.f32 %v2698_v48, 0.0 }
 0x2cc   :  { %v2415_v54 = vpop.f32.mrf.mxu1  ;;  %v2704_v56 = vpop.f32.mrf.mxu0 }
 0x2cd   :  { %v4828_v24 = vpack.c.bf16 %v2800_v60, %v2799_v37  ;;  %v5007_v37 = vld [vmem:[#allocation15_spill] sm:$0xff] }
 0x2ce   :  { %v4830_v8 = vpop.f32.mrf.mxu1  ;;  %v4832_v15 = vpop.f32.mrf.mxu0 }
 0x2d0   :  { %v2418_v10 = vpop.f32.mrf.mxu1  ;;  %v2707_v16 = vpop.f32.mrf.mxu0 }
 0x2d1   :  { %v5008_v10 = vld [vmem:[#allocation11_spill] sm:$0xff] }
 0x2d2   :  { %v4834_v6 = vpop.f32.mrf.mxu1  ;;  %v4836_v18 = vpop.f32.mrf.mxu0 }
 0x2d4   :  { %v2423_v12 = vpop.f32.mrf.mxu1  ;;  %v2712_v23 = vpop.f32.mrf.mxu0 }
 0x2d6   :  { %v2424_v0 = vpop.f32.mrf.mxu1  ;;  %v4838_v49 = vpop.f32.mrf.mxu0 }
 0x2d8   :  { %v2426_v44 = vpop.f32.mrf.mxu1  ;;  %v2715_v46 = vpop.f32.mrf.mxu0 }
 0x2d9   :  { %v5009_v44 = vld [vmem:[#allocation24_spill] sm:$0xff] }
 0x2da   :  { %v2429_v30 = vpop.f32.mrf.mxu1  ;;  %v2718_v38 = vpop.f32.mrf.mxu0 }
 0x2dc   :  { %v2431_v35 = vpop.f32.mrf.mxu1  ;;  %v2720_v43 = vpop.f32.mrf.mxu0 }
 0x2de   :  { %v2432_v2 = vpop.f32.mrf.mxu1  ;;  %v2721_v53 = vpop.f32.mrf.mxu0 }
 0x2e0   :  { %v2434_v52 = vpop.f32.mrf.mxu1  ;;  %v2723_v39 = vpop.f32.mrf.mxu0 }
 0x2e1   :  { %v5010_v39 = vld [vmem:[#allocation9_spill] sm:$0xff] }
 0x2e2   :  { %v2437_v11 = vpop.f32.mrf.mxu1  ;;  %v2726_v36 = vpop.f32.mrf.mxu0 }
 0x2e3   :  { %v2438_v46 = vadd.f32 %v2437_v11, %v5009_v44  ;;  %v5013_v11 = vld [vmem:[#allocation31_spill] sm:$0xff] }
 0x2e4   :  { %v2439_v14 = vpop.f32.mrf.mxu1  ;;  %v2728_v21 = vpop.f32.mrf.mxu0 }
 0x2e5   :  { %v2433_v14 = vadd.f32 %v2432_v2, %v5010_v39  ;;  %v2422_v2 = vadd.f32 %v4834_v6, %v5013_v11 }
 0x2e6   :  { %v2440_v47 = vpop.f32.mrf.mxu1  ;;  %v2729_v59 = vpop.f32.mrf.mxu0 }
 0x2e7   :  { %v2441_v60 = vadd.f32 %v2440_v47, %v5007_v37  ;;  %v2727_v47 = vadd.f32 %v2726_v36, %v2438_v46  ;;  %v2962_v46 = vld [vmem:[%s4881_s1] sm:$0xf] }
 0x2e8   :  { %v2442_v9 = vpop.f32.mrf.mxu1  ;;  %v2731_v13 = vpop.f32.mrf.mxu0 }
 0x2e9   :  { %v2730_v21 = vadd.f32 %v2729_v59, %v2441_v60 }
 0x2ea   :  { %v2445_v19 = vpop.f32.mrf.mxu1  ;;  %v2734_v61 = vpop.f32.mrf.mxu0 }
 0x2eb   :  { %v2446_v41 = vadd.f32 %v2445_v19, %v5006_v33 }
 0x2ec   :  { %v2447_v26 = vpop.f32.mrf.mxu1  ;;  %v2736_v27 = vpop.f32.mrf.mxu0 }
 0x2ed   :  { %v2735_v35 = vadd.f32 %v2734_v61, %v2446_v41  ;;  %v5011_v26 = vld [vmem:[#allocation30_spill] sm:$0xff]  ;;  %v2807_v61 = vmax.f32 %v2727_v47, 0.0 }
 0x2ee   :  { %v2448_v20 = vpop.f32.mrf.mxu1  ;;  %v2737_v62 = vpop.f32.mrf.mxu0  ;;  %v2430_v27 = vadd.f32 %v2429_v30, %v5011_v26 }
 0x2ef   :  { %v2449_v25 = vadd.f32 %v2448_v20, %v5004_v34  ;;  %v2809_v20 = vmax.f32 %v2735_v35, 0.0  ;;  %v2808_v34 = vmax.f32 %v2730_v21, 0.0 }
 0x2f0   :  { %v2450_v55 = vpop.f32.mrf.mxu1  ;;  %v2739_v28 = vpop.f32.mrf.mxu0  ;;  %v2719_v59 = vadd.f32 %v2718_v38, %v2430_v27  ;;  %v2971_v27 = vmul.f32 -0.5, %v2962_v46 }
 0x2f1   :  { %v2738_v54 = vadd.f32 %v2737_v62, %v2449_v25  ;;  %v5012_v55 = vld [vmem:[#allocation8_spill] sm:$0xff] }
 0x2f2   :  { %v2453_v5 = vpop.f32.mrf.mxu1  ;;  %v2742_v40 = vpop.f32.mrf.mxu0  ;;  %v2425_v28 = vadd.f32 %v2424_v0, %v5012_v55  ;;  %v5015_v0 = vld [vmem:[#allocation17_spill] sm:$0xff] }
 0x2f3   :  { %v2454_v3 = vadd.f32 %v2453_v5, %v5005_v1  ;;  %v2810_v9 = vmax.f32 %v2738_v54, 0.0  ;;  %v2722_v5 = vadd.f32 %v2721_v53, %v2433_v14  ;;  %v5014_v1 = vld [vmem:[#allocation26_spill] sm:$0xff]  ;;  %v2414_v53 = vadd.f32 %v4824_v32, %v5015_v0 }
 0x2f4   :  { %v2455_v58 = vpop.f32.mrf.mxu1  ;;  %v2744_v48 = vpop.f32.mrf.mxu0  ;;  %v2417_v30 = vadd.f32 %v4830_v8, %v5014_v1  ;;  %v2714_v36 = vadd.f32 %v4838_v49, %v2425_v28  ;;  %v2964_v14 = vrot.slane %v2962_v46, 4 }
 0x2f5   :  { %v2743_v56 = vadd.f32 %v2742_v40, %v2454_v3  ;;  %v2843_v25 = vpack.c.bf16 %v2810_v9, %v2809_v20  ;;  %v2806_v3 = vmax.f32 %v2722_v5, 0.0  ;;  %v2842_v40 = vpack.c.bf16 %v2808_v34, %v2807_v61 }
 0x2f6   :  { %v2456_v57 = vpop.f32.mrf.mxu1  ;;  %v2745_v12 = vpop.f32.mrf.mxu0  ;;  %v2805_v58 = vmax.f32 %v2719_v59, 0.0  ;;  %v2706_v6 = vadd.f32 %v4832_v15, %v2417_v30  ;;  %v2804_v38 = vmax.f32 %v2714_v36, 0.0  ;;  %v2703_v8 = vadd.f32 %v4826_v22, %v2414_v53 }
 0x2f7   :  { %v2457_v16 = vadd.f32 %v2456_v57, %v5008_v10  ;;  %v2811_v13 = vmax.f32 %v2743_v56, 0.0  ;;  %v2972_v20 = vmul.f32 %v2971_v27, %v2962_v46 }
 0x2f8   :  { %v2458_v23 = vpop.f32.mrf.mxu1  ;;  %v2747_v52 = vpop.f32.mrf.mxu0  ;;  %v2841_v33 = vpack.c.bf16 %v2806_v3, %v2805_v58  ;;  %v2802_v41 = vmax.f32 %v2706_v6, 0.0 }
 0x2f9   :  { %v2746_v43 = vadd.f32 %v2745_v12, %v2457_v16 }
 0x2fb   :  { %v2812_v19 = vmax.f32 %v2746_v43, 0.0 }
 0x2fd   :  { %v2844_v62 = vpack.c.bf16 %v2812_v19, %v2811_v13 }
 0x2ff   :  { %3243 = vmatprep.subr.bf16.mxu1 %v2844_v62 }
 0x300   :  { %3244 = vmatpush3.bf16.msra.mxu1 %v4817_v7  ;;  %v2711_v7 = vadd.f32 %v4836_v18, %v2422_v2 }
 0x301   :  { %3245 = vmatprep.subr.bf16.mxu1 %v2843_v25 }
 0x302   :  { %v2803_v49 = vmax.f32 %v2711_v7, 0.0 }
 0x303   :  { %v2851_v37 = vpop.permute.xlu1 %2850 }
 0x304   :  { %3246 = vmatpush3.bf16.msra.mxu1 %v4813_v45  ;;  %v2840_v48 = vpack.c.bf16 %v2804_v38, %v2803_v49  ;;  %v2801_v45 = vmax.f32 %v2703_v8, 0.0 }
 0x305   :  { %3247 = vmatprep.subr.bf16.mxu1 %v2842_v40 }
 0x306   :  { %v2839_v32 = vpack.c.bf16 %v2802_v41, %v2801_v45 }
 0x308   :  { %3248 = vmatpush3.bf16.msra.mxu1 %v4809_v51  ;;  %v3184_v51 = vcombine.low %v4794_v31, %v4794_v31 }
 0x309   :  { %3249 = vmatprep.subr.bf16.mxu1 %v2841_v33 }
 0x30c   :  { %3250 = vmatpush3.bf16.msra.mxu1 %v4805_v63 }
 0x30d   :  { %3251 = vmatprep.subr.bf16.mxu1 %v2840_v48 }
 0x310   :  { %3252 = vmatpush3.bf16.msra.mxu1 %v4796_v17 }
 0x311   :  { %3253 = vmatprep.subr.bf16.mxu1 %v2839_v32 }
 0x314   :  { %3254 = vmatpush3.bf16.msra.mxu1 %v4783_v42 }
 0x315   :  { %3255 = vmatprep.subr.bf16.mxu1 %v4828_v24 }
 0x318   :  { %3256 = vmatpush3.bf16.msra.mxu1 %v4774_v29 }
 0x319   :  { %3257 = vmatprep.subr.bf16.mxu1 %v4821_v4 }
 0x31c   :  { %3258 = vmatpush3.bf16.msra.mxu1 %v4766_v50 }
 0x31f   :  { %2940 = vmatmul.mubr.bf16.vlgmr.msra.gmra.mxu1 %v3184_v51 }
 0x35f   :  { %v3237_v63 = vpop.f32.mrf.mxu0 }
 0x361   :  { %v3238_v22 = vpop.f32.mrf.mxu0 }
 0x362   :  { %v3239_v15 = vadd.f32 %v3238_v22, %v3237_v63 }
 0x363   :  { %v3240_v18 = vpop.f32.mrf.mxu0 }
 0x364   :  { %v2902_v60 = vadd.f32 %v3239_v15, %v2851_v37 }
 0x365   :  { %v3241_v17 = vpop.f32.mrf.mxu0 }
 0x3df   :  { %v3259_v57 = vpop.f32.mrf.mxu1 }
 0x3e1   :  { %v3260_v42 = vpop.f32.mrf.mxu1 }
 0x3e2   :  { %v3261_v24 = vadd.f32 %v3260_v42, %v3259_v57 }
 0x3e3   :  { %v3262_v54 = vpop.f32.mrf.mxu1 }
 0x3e4   :  { %v2942_v29 = vadd.f32 %v3261_v24, %v2902_v60 }
 0x3e5   :  { %v3263_v56 = vpop.f32.mrf.mxu1 }
 0x3e6   :  { %v2948_v4 = vand.u32 2147483647, %v2942_v29  ;;  %v2947_v39 = vmax.f32 %v2942_v29, 0.0 }
 0x3e8   :  { %v2949_v10 = vsub.f32 0.0, %v2948_v4 }
 0x3ea   :  { %v2950_v16 = vmul.f32 1.442695, %v2949_v10 }
 0x3ec   :  { %3580 = vpow2.f32 %v2950_v16 }
 0x3f9   :  { %v3581_v31 = vpop.eup %3580 }
 0x3fa   :  { %v2952_v50 = vadd.f32 1.0, %v3581_v31  ;;  %v2955_v12 = vmul.f32 -0.5, %v3581_v31  ;;  %v2958_v44 = vand.u32 2147483647, %v3581_v31 }
 0x3fc   :  { %3582 = vlog2.f32 %v2952_v50  ;;  %v2956_v23 = vadd.f32 1.0, %v2955_v12  ;;  %vm2959_vm2 = vcmp.lt.f32.partialorder %v2958_v44, 0.0004427343 }
 0x3fe   :  { %v2957_v52 = vmul.f32 %v3581_v31, %v2956_v23 }
 0x409   :  { %v3583_v35 = vpop.eup %3582 }
 0x40a   :  { %v2954_v43 = vmul.f32 0.6931472, %v3583_v35 }
 0x40c   :  { %v2960_v21 = vsel %vm2959_vm2, %v2957_v52, %v2954_v43 }
 0x40d   :  { %v2961_v9 = vadd.f32 %v2960_v21, %v2947_v39 }
 0x40f   :  { %v2966_v13 = vmul.f32 %v2964_v14, %v2961_v9  ;;  %3584 = vlog2.f32 %v2961_v9 }
 0x411   :  { %v2968_v19 = vrot.slane %v2966_v13, 4 }
 0x413   :  { %v2970_v26 = vadd.f32 %v2968_v19, %v2942_v29 }
 0x415   :  { %2981 = vst.msk [vmem:[%s4887_s7] sm:$0xf] %vm2980_vm3, %v2970_v26 }
 0x41c   :  { %v3585_v47 = vpop.eup %3584 }
 0x41d   :  { %v2974_v62 = vmul.f32 0.6931472, %v3585_v47 }
 0x41f   :  { %v2976_v55 = vrot.slane %v2974_v62, 4 }
 0x421   :  { %v2978_v28 = vsub.f32 %v2972_v20, %v2976_v55 }
 0x423   :  { %v3186_v5 = vadd.f32 -0.9189385, %v2978_v28 }
 0x425   :  { %2982 = vst.msk [vmem:[%s4887_s7 + $0x4] sm:$0xf] %vm2980_vm3, %v3186_v5 }
 0x426   :  { %2987 = vsyncpa [#allocation3], 1 }

</bundles_post_ra>
